<compile_context>
chip_gen: v5e
topology: v5e:2x2
jax: 0.10.0
libtpu: 0.0.40
codegen_flags: <defaults>
</compile_context>

<pallas_src>
import functools
import math

import jax
import jax.numpy as jnp
from jax.experimental import pallas as pl
from jax.experimental.pallas import tpu as pltpu

EPS = 1e-5  # nn.LayerNorm default eps
LANE = 128


def _layernorm(x, w, b):
    mu = jnp.mean(x, axis=-1, keepdims=True)
    xc = x - mu
    var = jnp.mean(xc * xc, axis=-1, keepdims=True)
    return xc * jax.lax.rsqrt(var + EPS) * w + b


def fused_transformer_kernel(
        x_ref,                                    # (Bb, S, E)
        qkv_w_ref, qkv_b_ref,                     # (L, E, 3E), (L, 1, 3E)
        o_w_ref, o_b_ref,                         # (L, E, E),  (L, 1, E)
        n1_w_ref, n1_b_ref, n2_w_ref, n2_b_ref,   # (L, 1, E) each
        l1_w_ref, l1_b_ref,                       # (L, E, F), (L, 1, F)
        l2_w_ref, l2_b_ref,                       # (L, F, E), (L, 1, E)
        fc_w_ref, fc_b_ref,                       # (E, Opad), (1, Opad)
        out_ref,                                  # (Bb, 1, Opad)
        *, num_heads):
    Bb, S, E = x_ref.shape
    L = qkv_w_ref.shape[0]
    H = num_heads
    dh = E // H
    N = Bb * S

    # token-major 2-D residual stream (leading-dim reshape only: layout free)
    x = x_ref[...].reshape(N, E)

    for l in range(L):                            # static unroll (small L)
        # ---- fused QKV projection: one fat matmul per layer ----
        qkv = (jnp.dot(x, qkv_w_ref[l], preferred_element_type=jnp.float32)
               + qkv_b_ref[l])                    # (N, 3E); 1/sqrt(dh) folded in
        qkv3 = qkv.reshape(Bb, S, 3 * E)          # leading-dim split, layout free

        # ---- multi-head self attention (per-head scores; static head loop) ----
        ctx_heads = []
        for h in range(H):
            qh = qkv3[:, :, h * dh:(h + 1) * dh]                  # (Bb, S, dh)
            kh = qkv3[:, :, E + h * dh:E + (h + 1) * dh]
            vh = qkv3[:, :, 2 * E + h * dh:2 * E + (h + 1) * dh]

            s = jnp.einsum('bsd,btd->bst', qh, kh,
                           preferred_element_type=jnp.float32)    # (Bb, S, S)
            s = s - jnp.max(s, axis=-1, keepdims=True)
            p = jnp.exp(s)
            p = p / jnp.sum(p, axis=-1, keepdims=True)            # exact softmax
            ctx_heads.append(
                jnp.einsum('bst,btd->bsd', p, vh,
                           preferred_element_type=jnp.float32))   # (Bb, S, dh)

        ctx = jnp.concatenate(ctx_heads, axis=-1).reshape(N, E)   # head-major (N, E)
        attn = (jnp.dot(ctx, o_w_ref[l], preferred_element_type=jnp.float32)
                + o_b_ref[l])

        # residual + LayerNorm 1 (post-LN, PyTorch norm_first=False)
        x = _layernorm(x + attn, n1_w_ref[l], n1_b_ref[l])

        # ---- feed forward (ReLU) ----
        ff = jnp.dot(x, l1_w_ref[l], preferred_element_type=jnp.float32) + l1_b_ref[l]
        ff = jnp.maximum(ff, 0.0)
        ff = jnp.dot(ff, l2_w_ref[l], preferred_element_type=jnp.float32) + l2_b_ref[l]

        # residual + LayerNorm 2
        x = _layernorm(x + ff, n2_w_ref[l], n2_b_ref[l])

    # mean over sequence + final Linear (lane-dense padded output slab)
    pooled = jnp.mean(x.reshape(Bb, S, E), axis=1)                # (Bb, E)
    out = (jnp.dot(pooled, fc_w_ref[...], preferred_element_type=jnp.float32)
           + fc_b_ref[...])                                       # (Bb, Opad)
    out_ref[:, 0, :] = out


# ---------------------------------------------------------------------------
# Parameter construction (PyTorch layout) and one-time host-side packing
# ---------------------------------------------------------------------------
def init_params(key, input_size, embedding_size, num_layers, num_heads,
                ff_hidden_size, seq_length, output_size):
    E, F = embedding_size, ff_hidden_size
    keys = jax.random.split(key, 2 + num_layers * 4)
    ki = iter(keys)

    def rnd(k, shape):
        return (0.02 * jax.random.normal(k, shape)).astype(jnp.float32)

    params = {
        "embedding": rnd(next(ki), (input_size, E)),
        # nn.Parameter(torch.zeros(1, seq_length, embedding_size))
        "pos_enc": jnp.zeros((1, seq_length, E), jnp.float32),
        "layers": [],
        "fc_w": rnd(next(ki), (output_size, E)),
        "fc_b": jnp.zeros((output_size,), jnp.float32),
    }
    for _ in range(num_layers):
        params["layers"].append((
            rnd(next(ki), (3 * E, E)),            # in_proj_weight
            jnp.zeros((3 * E,), jnp.float32),     # in_proj_bias
            rnd(next(ki), (E, E)),                # out_proj.weight
            jnp.zeros((E,), jnp.float32),         # out_proj.bias
            jnp.ones((E,), jnp.float32),          # norm1.weight
            jnp.zeros((E,), jnp.float32),         # norm1.bias
            jnp.ones((E,), jnp.float32),          # norm2.weight
            jnp.zeros((E,), jnp.float32),         # norm2.bias
            rnd(next(ki), (F, E)),                # linear1.weight
            jnp.zeros((F,), jnp.float32),         # linear1.bias
            rnd(next(ki), (E, F)),                # linear2.weight
            jnp.zeros((E,), jnp.float32),         # linear2.bias
        ))
    return params


def pack_params(params, num_heads):
    """One-time transform (call OUTSIDE jit): stack per-layer weights,
    pre-transpose for x @ w, fuse Q/K/V into a lane-dense (E, 3E) block,
    fold 1/sqrt(dh) into the Q slice, pad the final Linear to 128 lanes."""
    E = params["embedding"].shape[1]
    dh = E // num_heads
    scale = 1.0 / math.sqrt(dh)

    qkv_w, qkv_b, o_w, o_b = [], [], [], []
    n1w, n1b, n2w, n2b = [], [], [], []
    w1, b1, w2, b2 = [], [], [], []
    for (in_w, in_b, out_w, out_b, n1_w, n1_b, n2_w, n2_b,
         l1_w, l1_b, l2_w, l2_b) in params["layers"]:
        wq, wk, wv = in_w[:E], in_w[E:2 * E], in_w[2 * E:]        # each (E, E)
        bq, bk, bv = in_b[:E], in_b[E:2 * E], in_b[2 * E:]        # each (E,)
        qkv_w.append(jnp.concatenate([wq.T * scale, wk.T, wv.T], axis=1))  # (E, 3E)
        qkv_b.append(jnp.concatenate([bq * scale, bk, bv]).reshape(1, 3 * E))
        o_w.append(out_w.T)                                       # (E, E)
        o_b.append(out_b.reshape(1, E))
        n1w.append(n1_w.reshape(1, E)); n1b.append(n1_b.reshape(1, E))
        n2w.append(n2_w.reshape(1, E)); n2b.append(n2_b.reshape(1, E))
        w1.append(l1_w.T)                                         # (E, F)
        b1.append(l1_b.reshape(1, -1))
        w2.append(l2_w.T)                                         # (F, E)
        b2.append(l2_b.reshape(1, E))

    O = params["fc_b"].shape[0]
    o_pad = ((O + LANE - 1) // LANE) * LANE
    fc_w = jnp.zeros((E, o_pad), jnp.float32).at[:, :O].set(params["fc_w"].T)
    fc_b = jnp.zeros((1, o_pad), jnp.float32).at[0, :O].set(params["fc_b"])

    stack = lambda xs: jnp.stack(xs, axis=0)
    return (stack(qkv_w), stack(qkv_b), stack(o_w), stack(o_b),
            stack(n1w), stack(n1b), stack(n2w), stack(n2b),
            stack(w1), stack(b1), stack(w2), stack(b2), fc_w, fc_b)


def _pick_block_b(B, S):
    """>=2 grid steps when B>=2 (v7x megacore) while keeping per-step rows tall."""
    if B <= 1:
        return 1
    cand = max(1, min(B // 2, max(1, 512 // S)))
    while B % cand:
        cand -= 1
    return cand


def transformer_forward(embedding, pos_enc, packed, tokens, *, num_heads,
                        output_size):
    # embedding lookup + positional encoding (plain-JAX glue: gather + add)
    # NOTE: dropout layers are identity at inference and are omitted.
    x = (embedding[tokens] + pos_enc).astype(jnp.float32)
    B, S, E = x.shape

    weights = list(packed)
    qkv_w, _, _, _, _, _, _, _, w1, _, _, _, fc_w, _ = packed
    L = qkv_w.shape[0]
    F = w1.shape[-1]
    o_pad = fc_w.shape[-1]

    block_b = _pick_block_b(B, S)
    grid = (B // block_b,)

    x_spec = pl.BlockSpec((block_b, S, E), lambda i: (i, 0, 0))
    # Constant index maps -> weights DMA'd once and kept VMEM-resident.
    w_specs = [pl.BlockSpec(w.shape, lambda i, nd=w.ndim: (0,) * nd)
               for w in weights]
    out_spec = pl.BlockSpec((block_b, 1, o_pad), lambda i: (i, 0, 0))

    weight_bytes = sum(int(w.size) * w.dtype.itemsize for w in weights)
    io_bytes = 2 * (block_b * S * E + block_b * o_pad) * 4
    vmem_limit = None
    if weight_bytes + io_bytes > (24 << 20):
        # explicit scoped-VMEM request for scaled configs (bounded for v7x's 64 MiB)
        vmem_limit = min(64 << 20, max(32 << 20, 2 * (weight_bytes + io_bytes)))

    flops = int(B * S * L * (8 * E * E + 4 * S * E + 4 * E * F)
                + 2 * B * E * o_pad)
    transcendentals = int(L * B * num_heads * S * S)
    bytes_accessed = int(weight_bytes + x.size * 4 + B * o_pad * 4)

    out = pl.pallas_call(
        functools.partial(fused_transformer_kernel, num_heads=num_heads),
        out_shape=jax.ShapeDtypeStruct((B, 1, o_pad), jnp.float32),
        grid=grid,
        in_specs=[x_spec] + w_specs,
        out_specs=out_spec,
        compiler_params=pltpu.CompilerParams(
            dimension_semantics=("parallel",),
            vmem_limit_bytes=vmem_limit),
        cost_estimate=pl.CostEstimate(flops=flops,
                                      transcendentals=transcendentals,
                                      bytes_accessed=bytes_accessed),
    )(x, *weights)
    return out[:, 0, :output_size]


if __name__ == "__main__":
    # small, shape-consistent config
    input_size = 32        # vocab
    embedding_size = 32
    num_layers = 2
    num_heads = 4
    ff_hidden_size = 64
    seq_length = 8
    output_size = 16
    batch = 2

    key = jax.random.PRNGKey(0)
    k_param, k_tok = jax.random.split(key)
    params = init_params(k_param, input_size, embedding_size, num_layers,
                         num_heads, ff_hidden_size, seq_length, output_size)
    tokens = jax.random.randint(k_tok, (batch, seq_length), 0, input_size,
                                dtype=jnp.int32)

    # One-time packing, hoisted out of the jitted forward (perf feedback #8).
    packed = pack_params(params, num_heads)

    fwd = jax.jit(functools.partial(transformer_forward,
                                    num_heads=num_heads,
                                    output_size=output_size))
    out = fwd(params["embedding"], params["pos_enc"], packed, tokens)
    jax.block_until_ready(out)
    assert out.shape == (batch, output_size)
    print("KERNEL_OK")
</pallas_src>

<mosaic_0001>
module attributes {stable_mosaic.version = 11 : i64} {
  func.func @fused_transformer_kernel(%arg0: i32, %arg1: memref<1x8x32xf32, #tpu.memory_space<vmem>>, %arg2: memref<2x32x96xf32, #tpu.memory_space<vmem>>, %arg3: memref<2x1x96xf32, #tpu.memory_space<vmem>>, %arg4: memref<2x32x32xf32, #tpu.memory_space<vmem>>, %arg5: memref<2x1x32xf32, #tpu.memory_space<vmem>>, %arg6: memref<2x1x32xf32, #tpu.memory_space<vmem>>, %arg7: memref<2x1x32xf32, #tpu.memory_space<vmem>>, %arg8: memref<2x1x32xf32, #tpu.memory_space<vmem>>, %arg9: memref<2x1x32xf32, #tpu.memory_space<vmem>>, %arg10: memref<2x32x64xf32, #tpu.memory_space<vmem>>, %arg11: memref<2x1x64xf32, #tpu.memory_space<vmem>>, %arg12: memref<2x64x32xf32, #tpu.memory_space<vmem>>, %arg13: memref<2x1x32xf32, #tpu.memory_space<vmem>>, %arg14: memref<32x128xf32, #tpu.memory_space<vmem>>, %arg15: memref<1x128xf32, #tpu.memory_space<vmem>>, %arg16: memref<1x1x128xf32, #tpu.memory_space<vmem>>) attributes {dimension_semantics = [#tpu.dimension_semantics<parallel>], iteration_bounds = array<i64: 2>, scalar_prefetch = 0 : i64, scratch_operands = 0 : i64, tpu.core_type = #tpu.core_type<tc>, window_params = [{transform_indices = @transform_0, window_bounds = array<i64: 1, 8, 32>}, {pipeline_mode = #tpu.pipeline_mode<synchronous>, transform_indices = @transform_1, window_bounds = array<i64: 2, 32, 96>}, {pipeline_mode = #tpu.pipeline_mode<synchronous>, transform_indices = @transform_2, window_bounds = array<i64: 2, 1, 96>}, {pipeline_mode = #tpu.pipeline_mode<synchronous>, transform_indices = @transform_3, window_bounds = array<i64: 2, 32, 32>}, {pipeline_mode = #tpu.pipeline_mode<synchronous>, transform_indices = @transform_4, window_bounds = array<i64: 2, 1, 32>}, {pipeline_mode = #tpu.pipeline_mode<synchronous>, transform_indices = @transform_5, window_bounds = array<i64: 2, 1, 32>}, {pipeline_mode = #tpu.pipeline_mode<synchronous>, transform_indices = @transform_6, window_bounds = array<i64: 2, 1, 32>}, {pipeline_mode = #tpu.pipeline_mode<synchronous>, transform_indices = @transform_7, window_bounds = array<i64: 2, 1, 32>}, {pipeline_mode = #tpu.pipeline_mode<synchronous>, transform_indices = @transform_8, window_bounds = array<i64: 2, 1, 32>}, {pipeline_mode = #tpu.pipeline_mode<synchronous>, transform_indices = @transform_9, window_bounds = array<i64: 2, 32, 64>}, {pipeline_mode = #tpu.pipeline_mode<synchronous>, transform_indices = @transform_10, window_bounds = array<i64: 2, 1, 64>}, {pipeline_mode = #tpu.pipeline_mode<synchronous>, transform_indices = @transform_11, window_bounds = array<i64: 2, 64, 32>}, {pipeline_mode = #tpu.pipeline_mode<synchronous>, transform_indices = @transform_12, window_bounds = array<i64: 2, 1, 32>}, {pipeline_mode = #tpu.pipeline_mode<synchronous>, transform_indices = @transform_13, window_bounds = array<i64: 32, 128>}, {pipeline_mode = #tpu.pipeline_mode<synchronous>, transform_indices = @transform_14, window_bounds = array<i64: 1, 128>}, {transform_indices = @transform_15, window_bounds = array<i64: 1, 1, 128>}]} {
    %c0 = arith.constant 0 : index
    %c0_0 = arith.constant 0 : index
    %c0_1 = arith.constant 0 : index
    %0 = vector.load %arg1[%c0, %c0_0, %c0_1] : memref<1x8x32xf32, #tpu.memory_space<vmem>>, vector<1x8x32xf32>
    %1 = vector.shape_cast %0 : vector<1x8x32xf32> to vector<8x32xf32>
    %c0_2 = arith.constant 0 : index
    %c0_3 = arith.constant 0 : index
    %c0_4 = arith.constant 0 : index
    %2 = vector.load %arg2[%c0_2, %c0_3, %c0_4] : memref<2x32x96xf32, #tpu.memory_space<vmem>>, vector<1x32x96xf32>
    %3 = vector.shape_cast %2 : vector<1x32x96xf32> to vector<32x96xf32>
    %cst = arith.constant dense<0.000000e+00> : vector<8x96xf32>
    %4 = tpu.matmul %1, %3, %cst {dimension_numbers = #tpu.dot_dimension_numbers<[1], [0], [0], [1], [0, 0, 1, 1], [], []>} : vector<8x32xf32>, vector<32x96xf32>, vector<8x96xf32> -> vector<8x96xf32>
    %c0_5 = arith.constant 0 : index
    %c0_6 = arith.constant 0 : index
    %c0_7 = arith.constant 0 : index
    %5 = vector.load %arg3[%c0_5, %c0_6, %c0_7] : memref<2x1x96xf32, #tpu.memory_space<vmem>>, vector<1x1x96xf32>
    %6 = vector.shape_cast %5 : vector<1x1x96xf32> to vector<1x96xf32>
    %7 = vector.broadcast %6 : vector<1x96xf32> to vector<8x96xf32>
    %8 = arith.addf %4, %7 : vector<8x96xf32>
    %9 = vector.shape_cast %8 : vector<8x96xf32> to vector<1x8x96xf32>
    %10 = vector.extract_strided_slice %9 {offsets = [0, 0, 0], sizes = [1, 8, 8], strides = [1, 1, 1]} : vector<1x8x96xf32> to vector<1x8x8xf32>
    %11 = vector.extract_strided_slice %9 {offsets = [0, 0, 32], sizes = [1, 8, 8], strides = [1, 1, 1]} : vector<1x8x96xf32> to vector<1x8x8xf32>
    %12 = vector.extract_strided_slice %9 {offsets = [0, 0, 64], sizes = [1, 8, 8], strides = [1, 1, 1]} : vector<1x8x96xf32> to vector<1x8x8xf32>
    "tpu.trace_start"() <{level = 10 : i32, message = "bsd,btd->bst"}> : () -> ()
    %cst_8 = arith.constant dense<0.000000e+00> : vector<1x8x8xf32>
    %13 = tpu.matmul %10, %11, %cst_8 {dimension_numbers = #tpu.dot_dimension_numbers<[2], [2], [1], [1], [0, 0, 0, 1, 1, 1], [0], [0]>} : vector<1x8x8xf32>, vector<1x8x8xf32>, vector<1x8x8xf32> -> vector<1x8x8xf32>
    "tpu.trace_stop"() : () -> ()
    %cst_9 = arith.constant dense<0xFF800000> : vector<1x8xf32>
    %14 = vector.multi_reduction <maximumf>, %13, %cst_9 [2] : vector<1x8x8xf32> to vector<1x8xf32>
    %15 = vector.shape_cast %14 : vector<1x8xf32> to vector<1x8x1xf32>
    %16 = vector.broadcast %15 : vector<1x8x1xf32> to vector<1x8x8xf32>
    %17 = arith.subf %13, %16 : vector<1x8x8xf32>
    %18 = math.exp %17 : vector<1x8x8xf32>
    %cst_10 = arith.constant dense<0.000000e+00> : vector<1x8xf32>
    %19 = vector.multi_reduction <add>, %18, %cst_10 [2] : vector<1x8x8xf32> to vector<1x8xf32>
    %20 = vector.shape_cast %19 : vector<1x8xf32> to vector<1x8x1xf32>
    %21 = vector.broadcast %20 : vector<1x8x1xf32> to vector<1x8x8xf32>
    %22 = arith.divf %18, %21 : vector<1x8x8xf32>
    "tpu.trace_start"() <{level = 10 : i32, message = "bst,btd->bsd"}> : () -> ()
    %cst_11 = arith.constant dense<0.000000e+00> : vector<1x8x8xf32>
    %23 = tpu.matmul %22, %12, %cst_11 {dimension_numbers = #tpu.dot_dimension_numbers<[2], [1], [1], [2], [0, 0, 0, 1, 1, 2], [0], [0]>} : vector<1x8x8xf32>, vector<1x8x8xf32>, vector<1x8x8xf32> -> vector<1x8x8xf32>
    "tpu.trace_stop"() : () -> ()
    %24 = vector.extract_strided_slice %9 {offsets = [0, 0, 8], sizes = [1, 8, 8], strides = [1, 1, 1]} : vector<1x8x96xf32> to vector<1x8x8xf32>
    %25 = vector.extract_strided_slice %9 {offsets = [0, 0, 40], sizes = [1, 8, 8], strides = [1, 1, 1]} : vector<1x8x96xf32> to vector<1x8x8xf32>
    %26 = vector.extract_strided_slice %9 {offsets = [0, 0, 72], sizes = [1, 8, 8], strides = [1, 1, 1]} : vector<1x8x96xf32> to vector<1x8x8xf32>
    "tpu.trace_start"() <{level = 10 : i32, message = "bsd,btd->bst"}> : () -> ()
    %cst_12 = arith.constant dense<0.000000e+00> : vector<1x8x8xf32>
    %27 = tpu.matmul %24, %25, %cst_12 {dimension_numbers = #tpu.dot_dimension_numbers<[2], [2], [1], [1], [0, 0, 0, 1, 1, 1], [0], [0]>} : vector<1x8x8xf32>, vector<1x8x8xf32>, vector<1x8x8xf32> -> vector<1x8x8xf32>
    "tpu.trace_stop"() : () -> ()
    %cst_13 = arith.constant dense<0xFF800000> : vector<1x8xf32>
    %28 = vector.multi_reduction <maximumf>, %27, %cst_13 [2] : vector<1x8x8xf32> to vector<1x8xf32>
    %29 = vector.shape_cast %28 : vector<1x8xf32> to vector<1x8x1xf32>
    %30 = vector.broadcast %29 : vector<1x8x1xf32> to vector<1x8x8xf32>
    %31 = arith.subf %27, %30 : vector<1x8x8xf32>
    %32 = math.exp %31 : vector<1x8x8xf32>
    %cst_14 = arith.constant dense<0.000000e+00> : vector<1x8xf32>
    %33 = vector.multi_reduction <add>, %32, %cst_14 [2] : vector<1x8x8xf32> to vector<1x8xf32>
    %34 = vector.shape_cast %33 : vector<1x8xf32> to vector<1x8x1xf32>
    %35 = vector.broadcast %34 : vector<1x8x1xf32> to vector<1x8x8xf32>
    %36 = arith.divf %32, %35 : vector<1x8x8xf32>
    "tpu.trace_start"() <{level = 10 : i32, message = "bst,btd->bsd"}> : () -> ()
    %cst_15 = arith.constant dense<0.000000e+00> : vector<1x8x8xf32>
    %37 = tpu.matmul %36, %26, %cst_15 {dimension_numbers = #tpu.dot_dimension_numbers<[2], [1], [1], [2], [0, 0, 0, 1, 1, 2], [0], [0]>} : vector<1x8x8xf32>, vector<1x8x8xf32>, vector<1x8x8xf32> -> vector<1x8x8xf32>
    "tpu.trace_stop"() : () -> ()
    %38 = vector.extract_strided_slice %9 {offsets = [0, 0, 16], sizes = [1, 8, 8], strides = [1, 1, 1]} : vector<1x8x96xf32> to vector<1x8x8xf32>
    %39 = vector.extract_strided_slice %9 {offsets = [0, 0, 48], sizes = [1, 8, 8], strides = [1, 1, 1]} : vector<1x8x96xf32> to vector<1x8x8xf32>
    %40 = vector.extract_strided_slice %9 {offsets = [0, 0, 80], sizes = [1, 8, 8], strides = [1, 1, 1]} : vector<1x8x96xf32> to vector<1x8x8xf32>
    "tpu.trace_start"() <{level = 10 : i32, message = "bsd,btd->bst"}> : () -> ()
    %cst_16 = arith.constant dense<0.000000e+00> : vector<1x8x8xf32>
    %41 = tpu.matmul %38, %39, %cst_16 {dimension_numbers = #tpu.dot_dimension_numbers<[2], [2], [1], [1], [0, 0, 0, 1, 1, 1], [0], [0]>} : vector<1x8x8xf32>, vector<1x8x8xf32>, vector<1x8x8xf32> -> vector<1x8x8xf32>
    "tpu.trace_stop"() : () -> ()
    %cst_17 = arith.constant dense<0xFF800000> : vector<1x8xf32>
    %42 = vector.multi_reduction <maximumf>, %41, %cst_17 [2] : vector<1x8x8xf32> to vector<1x8xf32>
    %43 = vector.shape_cast %42 : vector<1x8xf32> to vector<1x8x1xf32>
    %44 = vector.broadcast %43 : vector<1x8x1xf32> to vector<1x8x8xf32>
    %45 = arith.subf %41, %44 : vector<1x8x8xf32>
    %46 = math.exp %45 : vector<1x8x8xf32>
    %cst_18 = arith.constant dense<0.000000e+00> : vector<1x8xf32>
    %47 = vector.multi_reduction <add>, %46, %cst_18 [2] : vector<1x8x8xf32> to vector<1x8xf32>
    %48 = vector.shape_cast %47 : vector<1x8xf32> to vector<1x8x1xf32>
    %49 = vector.broadcast %48 : vector<1x8x1xf32> to vector<1x8x8xf32>
    %50 = arith.divf %46, %49 : vector<1x8x8xf32>
    "tpu.trace_start"() <{level = 10 : i32, message = "bst,btd->bsd"}> : () -> ()
    %cst_19 = arith.constant dense<0.000000e+00> : vector<1x8x8xf32>
    %51 = tpu.matmul %50, %40, %cst_19 {dimension_numbers = #tpu.dot_dimension_numbers<[2], [1], [1], [2], [0, 0, 0, 1, 1, 2], [0], [0]>} : vector<1x8x8xf32>, vector<1x8x8xf32>, vector<1x8x8xf32> -> vector<1x8x8xf32>
    "tpu.trace_stop"() : () -> ()
    %52 = vector.extract_strided_slice %9 {offsets = [0, 0, 24], sizes = [1, 8, 8], strides = [1, 1, 1]} : vector<1x8x96xf32> to vector<1x8x8xf32>
    %53 = vector.extract_strided_slice %9 {offsets = [0, 0, 56], sizes = [1, 8, 8], strides = [1, 1, 1]} : vector<1x8x96xf32> to vector<1x8x8xf32>
    %54 = vector.extract_strided_slice %9 {offsets = [0, 0, 88], sizes = [1, 8, 8], strides = [1, 1, 1]} : vector<1x8x96xf32> to vector<1x8x8xf32>
    "tpu.trace_start"() <{level = 10 : i32, message = "bsd,btd->bst"}> : () -> ()
    %cst_20 = arith.constant dense<0.000000e+00> : vector<1x8x8xf32>
    %55 = tpu.matmul %52, %53, %cst_20 {dimension_numbers = #tpu.dot_dimension_numbers<[2], [2], [1], [1], [0, 0, 0, 1, 1, 1], [0], [0]>} : vector<1x8x8xf32>, vector<1x8x8xf32>, vector<1x8x8xf32> -> vector<1x8x8xf32>
    "tpu.trace_stop"() : () -> ()
    %cst_21 = arith.constant dense<0xFF800000> : vector<1x8xf32>
    %56 = vector.multi_reduction <maximumf>, %55, %cst_21 [2] : vector<1x8x8xf32> to vector<1x8xf32>
    %57 = vector.shape_cast %56 : vector<1x8xf32> to vector<1x8x1xf32>
    %58 = vector.broadcast %57 : vector<1x8x1xf32> to vector<1x8x8xf32>
    %59 = arith.subf %55, %58 : vector<1x8x8xf32>
    %60 = math.exp %59 : vector<1x8x8xf32>
    %cst_22 = arith.constant dense<0.000000e+00> : vector<1x8xf32>
    %61 = vector.multi_reduction <add>, %60, %cst_22 [2] : vector<1x8x8xf32> to vector<1x8xf32>
    %62 = vector.shape_cast %61 : vector<1x8xf32> to vector<1x8x1xf32>
    %63 = vector.broadcast %62 : vector<1x8x1xf32> to vector<1x8x8xf32>
    %64 = arith.divf %60, %63 : vector<1x8x8xf32>
    "tpu.trace_start"() <{level = 10 : i32, message = "bst,btd->bsd"}> : () -> ()
    %cst_23 = arith.constant dense<0.000000e+00> : vector<1x8x8xf32>
    %65 = tpu.matmul %64, %54, %cst_23 {dimension_numbers = #tpu.dot_dimension_numbers<[2], [1], [1], [2], [0, 0, 0, 1, 1, 2], [0], [0]>} : vector<1x8x8xf32>, vector<1x8x8xf32>, vector<1x8x8xf32> -> vector<1x8x8xf32>
    "tpu.trace_stop"() : () -> ()
    %66 = tpu.concatenate %23, %37, %51, %65 in 2 : vector<1x8x8xf32>, vector<1x8x8xf32>, vector<1x8x8xf32>, vector<1x8x8xf32> -> vector<1x8x32xf32>
    %67 = vector.shape_cast %66 : vector<1x8x32xf32> to vector<8x32xf32>
    %c0_24 = arith.constant 0 : index
    %c0_25 = arith.constant 0 : index
    %c0_26 = arith.constant 0 : index
    %68 = vector.load %arg4[%c0_24, %c0_25, %c0_26] : memref<2x32x32xf32, #tpu.memory_space<vmem>>, vector<1x32x32xf32>
    %69 = vector.shape_cast %68 : vector<1x32x32xf32> to vector<32x32xf32>
    %cst_27 = arith.constant dense<0.000000e+00> : vector<8x32xf32>
    %70 = tpu.matmul %67, %69, %cst_27 {dimension_numbers = #tpu.dot_dimension_numbers<[1], [0], [0], [1], [0, 0, 1, 1], [], []>} : vector<8x32xf32>, vector<32x32xf32>, vector<8x32xf32> -> vector<8x32xf32>
    %c0_28 = arith.constant 0 : index
    %c0_29 = arith.constant 0 : index
    %c0_30 = arith.constant 0 : index
    %71 = vector.load %arg5[%c0_28, %c0_29, %c0_30] : memref<2x1x32xf32, #tpu.memory_space<vmem>>, vector<1x1x32xf32>
    %72 = vector.shape_cast %71 : vector<1x1x32xf32> to vector<1x32xf32>
    %73 = vector.broadcast %72 : vector<1x32xf32> to vector<8x32xf32>
    %74 = arith.addf %70, %73 : vector<8x32xf32>
    %75 = arith.addf %1, %74 : vector<8x32xf32>
    %c0_31 = arith.constant 0 : index
    %c0_32 = arith.constant 0 : index
    %c0_33 = arith.constant 0 : index
    %76 = vector.load %arg6[%c0_31, %c0_32, %c0_33] : memref<2x1x32xf32, #tpu.memory_space<vmem>>, vector<1x1x32xf32>
    %77 = vector.shape_cast %76 : vector<1x1x32xf32> to vector<1x32xf32>
    %c0_34 = arith.constant 0 : index
    %c0_35 = arith.constant 0 : index
    %c0_36 = arith.constant 0 : index
    %78 = vector.load %arg7[%c0_34, %c0_35, %c0_36] : memref<2x1x32xf32, #tpu.memory_space<vmem>>, vector<1x1x32xf32>
    %79 = vector.shape_cast %78 : vector<1x1x32xf32> to vector<1x32xf32>
    %cst_37 = arith.constant dense<0.000000e+00> : vector<8xf32>
    %80 = vector.multi_reduction <add>, %75, %cst_37 [1] : vector<8x32xf32> to vector<8xf32>
    %81 = vector.shape_cast %80 : vector<8xf32> to vector<8x1xf32>
    %cst_38 = arith.constant 3.200000e+01 : f32
    %82 = vector.broadcast %cst_38 : f32 to vector<8x1xf32>
    %83 = arith.divf %81, %82 : vector<8x1xf32>
    %84 = vector.broadcast %83 : vector<8x1xf32> to vector<8x32xf32>
    %85 = arith.subf %75, %84 : vector<8x32xf32>
    %86 = arith.mulf %85, %85 : vector<8x32xf32>
    %cst_39 = arith.constant dense<0.000000e+00> : vector<8xf32>
    %87 = vector.multi_reduction <add>, %86, %cst_39 [1] : vector<8x32xf32> to vector<8xf32>
    %88 = vector.shape_cast %87 : vector<8xf32> to vector<8x1xf32>
    %cst_40 = arith.constant 3.200000e+01 : f32
    %89 = vector.broadcast %cst_40 : f32 to vector<8x1xf32>
    %90 = arith.divf %88, %89 : vector<8x1xf32>
    %cst_41 = arith.constant 9.99999974E-6 : f32
    %91 = vector.broadcast %cst_41 : f32 to vector<8x1xf32>
    %92 = arith.addf %90, %91 : vector<8x1xf32>
    %93 = math.rsqrt %92 : vector<8x1xf32>
    %94 = vector.broadcast %93 : vector<8x1xf32> to vector<8x32xf32>
    %95 = arith.mulf %85, %94 : vector<8x32xf32>
    %96 = vector.broadcast %77 : vector<1x32xf32> to vector<8x32xf32>
    %97 = arith.mulf %95, %96 : vector<8x32xf32>
    %98 = vector.broadcast %79 : vector<1x32xf32> to vector<8x32xf32>
    %99 = arith.addf %97, %98 : vector<8x32xf32>
    %c0_42 = arith.constant 0 : index
    %c0_43 = arith.constant 0 : index
    %c0_44 = arith.constant 0 : index
    %100 = vector.load %arg10[%c0_42, %c0_43, %c0_44] : memref<2x32x64xf32, #tpu.memory_space<vmem>>, vector<1x32x64xf32>
    %101 = vector.shape_cast %100 : vector<1x32x64xf32> to vector<32x64xf32>
    %cst_45 = arith.constant dense<0.000000e+00> : vector<8x64xf32>
    %102 = tpu.matmul %99, %101, %cst_45 {dimension_numbers = #tpu.dot_dimension_numbers<[1], [0], [0], [1], [0, 0, 1, 1], [], []>} : vector<8x32xf32>, vector<32x64xf32>, vector<8x64xf32> -> vector<8x64xf32>
    %c0_46 = arith.constant 0 : index
    %c0_47 = arith.constant 0 : index
    %c0_48 = arith.constant 0 : index
    %103 = vector.load %arg11[%c0_46, %c0_47, %c0_48] : memref<2x1x64xf32, #tpu.memory_space<vmem>>, vector<1x1x64xf32>
    %104 = vector.shape_cast %103 : vector<1x1x64xf32> to vector<1x64xf32>
    %105 = vector.broadcast %104 : vector<1x64xf32> to vector<8x64xf32>
    %106 = arith.addf %102, %105 : vector<8x64xf32>
    %cst_49 = arith.constant 0.000000e+00 : f32
    %107 = vector.broadcast %cst_49 : f32 to vector<8x64xf32>
    %108 = arith.maximumf %106, %107 : vector<8x64xf32>
    %c0_50 = arith.constant 0 : index
    %c0_51 = arith.constant 0 : index
    %c0_52 = arith.constant 0 : index
    %109 = vector.load %arg12[%c0_50, %c0_51, %c0_52] : memref<2x64x32xf32, #tpu.memory_space<vmem>>, vector<1x64x32xf32>
    %110 = vector.shape_cast %109 : vector<1x64x32xf32> to vector<64x32xf32>
    %cst_53 = arith.constant dense<0.000000e+00> : vector<8x32xf32>
    %111 = tpu.matmul %108, %110, %cst_53 {dimension_numbers = #tpu.dot_dimension_numbers<[1], [0], [0], [1], [0, 0, 1, 1], [], []>} : vector<8x64xf32>, vector<64x32xf32>, vector<8x32xf32> -> vector<8x32xf32>
    %c0_54 = arith.constant 0 : index
    %c0_55 = arith.constant 0 : index
    %c0_56 = arith.constant 0 : index
    %112 = vector.load %arg13[%c0_54, %c0_55, %c0_56] : memref<2x1x32xf32, #tpu.memory_space<vmem>>, vector<1x1x32xf32>
    %113 = vector.shape_cast %112 : vector<1x1x32xf32> to vector<1x32xf32>
    %114 = vector.broadcast %113 : vector<1x32xf32> to vector<8x32xf32>
    %115 = arith.addf %111, %114 : vector<8x32xf32>
    %116 = arith.addf %99, %115 : vector<8x32xf32>
    %c0_57 = arith.constant 0 : index
    %c0_58 = arith.constant 0 : index
    %c0_59 = arith.constant 0 : index
    %117 = vector.load %arg8[%c0_57, %c0_58, %c0_59] : memref<2x1x32xf32, #tpu.memory_space<vmem>>, vector<1x1x32xf32>
    %118 = vector.shape_cast %117 : vector<1x1x32xf32> to vector<1x32xf32>
    %c0_60 = arith.constant 0 : index
    %c0_61 = arith.constant 0 : index
    %c0_62 = arith.constant 0 : index
    %119 = vector.load %arg9[%c0_60, %c0_61, %c0_62] : memref<2x1x32xf32, #tpu.memory_space<vmem>>, vector<1x1x32xf32>
    %120 = vector.shape_cast %119 : vector<1x1x32xf32> to vector<1x32xf32>
    %cst_63 = arith.constant dense<0.000000e+00> : vector<8xf32>
    %121 = vector.multi_reduction <add>, %116, %cst_63 [1] : vector<8x32xf32> to vector<8xf32>
    %122 = vector.shape_cast %121 : vector<8xf32> to vector<8x1xf32>
    %cst_64 = arith.constant 3.200000e+01 : f32
    %123 = vector.broadcast %cst_64 : f32 to vector<8x1xf32>
    %124 = arith.divf %122, %123 : vector<8x1xf32>
    %125 = vector.broadcast %124 : vector<8x1xf32> to vector<8x32xf32>
    %126 = arith.subf %116, %125 : vector<8x32xf32>
    %127 = arith.mulf %126, %126 : vector<8x32xf32>
    %cst_65 = arith.constant dense<0.000000e+00> : vector<8xf32>
    %128 = vector.multi_reduction <add>, %127, %cst_65 [1] : vector<8x32xf32> to vector<8xf32>
    %129 = vector.shape_cast %128 : vector<8xf32> to vector<8x1xf32>
    %cst_66 = arith.constant 3.200000e+01 : f32
    %130 = vector.broadcast %cst_66 : f32 to vector<8x1xf32>
    %131 = arith.divf %129, %130 : vector<8x1xf32>
    %cst_67 = arith.constant 9.99999974E-6 : f32
    %132 = vector.broadcast %cst_67 : f32 to vector<8x1xf32>
    %133 = arith.addf %131, %132 : vector<8x1xf32>
    %134 = math.rsqrt %133 : vector<8x1xf32>
    %135 = vector.broadcast %134 : vector<8x1xf32> to vector<8x32xf32>
    %136 = arith.mulf %126, %135 : vector<8x32xf32>
    %137 = vector.broadcast %118 : vector<1x32xf32> to vector<8x32xf32>
    %138 = arith.mulf %136, %137 : vector<8x32xf32>
    %139 = vector.broadcast %120 : vector<1x32xf32> to vector<8x32xf32>
    %140 = arith.addf %138, %139 : vector<8x32xf32>
    %c1 = arith.constant 1 : index
    %c0_68 = arith.constant 0 : index
    %c0_69 = arith.constant 0 : index
    %141 = vector.load %arg2[%c1, %c0_68, %c0_69] : memref<2x32x96xf32, #tpu.memory_space<vmem>>, vector<1x32x96xf32>
    %142 = vector.shape_cast %141 : vector<1x32x96xf32> to vector<32x96xf32>
    %cst_70 = arith.constant dense<0.000000e+00> : vector<8x96xf32>
    %143 = tpu.matmul %140, %142, %cst_70 {dimension_numbers = #tpu.dot_dimension_numbers<[1], [0], [0], [1], [0, 0, 1, 1], [], []>} : vector<8x32xf32>, vector<32x96xf32>, vector<8x96xf32> -> vector<8x96xf32>
    %c1_71 = arith.constant 1 : index
    %c0_72 = arith.constant 0 : index
    %c0_73 = arith.constant 0 : index
    %144 = vector.load %arg3[%c1_71, %c0_72, %c0_73] : memref<2x1x96xf32, #tpu.memory_space<vmem>>, vector<1x1x96xf32>
    %145 = vector.shape_cast %144 : vector<1x1x96xf32> to vector<1x96xf32>
    %146 = vector.broadcast %145 : vector<1x96xf32> to vector<8x96xf32>
    %147 = arith.addf %143, %146 : vector<8x96xf32>
    %148 = vector.shape_cast %147 : vector<8x96xf32> to vector<1x8x96xf32>
    %149 = vector.extract_strided_slice %148 {offsets = [0, 0, 0], sizes = [1, 8, 8], strides = [1, 1, 1]} : vector<1x8x96xf32> to vector<1x8x8xf32>
    %150 = vector.extract_strided_slice %148 {offsets = [0, 0, 32], sizes = [1, 8, 8], strides = [1, 1, 1]} : vector<1x8x96xf32> to vector<1x8x8xf32>
    %151 = vector.extract_strided_slice %148 {offsets = [0, 0, 64], sizes = [1, 8, 8], strides = [1, 1, 1]} : vector<1x8x96xf32> to vector<1x8x8xf32>
    "tpu.trace_start"() <{level = 10 : i32, message = "bsd,btd->bst"}> : () -> ()
    %cst_74 = arith.constant dense<0.000000e+00> : vector<1x8x8xf32>
    %152 = tpu.matmul %149, %150, %cst_74 {dimension_numbers = #tpu.dot_dimension_numbers<[2], [2], [1], [1], [0, 0, 0, 1, 1, 1], [0], [0]>} : vector<1x8x8xf32>, vector<1x8x8xf32>, vector<1x8x8xf32> -> vector<1x8x8xf32>
    "tpu.trace_stop"() : () -> ()
    %cst_75 = arith.constant dense<0xFF800000> : vector<1x8xf32>
    %153 = vector.multi_reduction <maximumf>, %152, %cst_75 [2] : vector<1x8x8xf32> to vector<1x8xf32>
    %154 = vector.shape_cast %153 : vector<1x8xf32> to vector<1x8x1xf32>
    %155 = vector.broadcast %154 : vector<1x8x1xf32> to vector<1x8x8xf32>
    %156 = arith.subf %152, %155 : vector<1x8x8xf32>
    %157 = math.exp %156 : vector<1x8x8xf32>
    %cst_76 = arith.constant dense<0.000000e+00> : vector<1x8xf32>
    %158 = vector.multi_reduction <add>, %157, %cst_76 [2] : vector<1x8x8xf32> to vector<1x8xf32>
    %159 = vector.shape_cast %158 : vector<1x8xf32> to vector<1x8x1xf32>
    %160 = vector.broadcast %159 : vector<1x8x1xf32> to vector<1x8x8xf32>
    %161 = arith.divf %157, %160 : vector<1x8x8xf32>
    "tpu.trace_start"() <{level = 10 : i32, message = "bst,btd->bsd"}> : () -> ()
    %cst_77 = arith.constant dense<0.000000e+00> : vector<1x8x8xf32>
    %162 = tpu.matmul %161, %151, %cst_77 {dimension_numbers = #tpu.dot_dimension_numbers<[2], [1], [1], [2], [0, 0, 0, 1, 1, 2], [0], [0]>} : vector<1x8x8xf32>, vector<1x8x8xf32>, vector<1x8x8xf32> -> vector<1x8x8xf32>
    "tpu.trace_stop"() : () -> ()
    %163 = vector.extract_strided_slice %148 {offsets = [0, 0, 8], sizes = [1, 8, 8], strides = [1, 1, 1]} : vector<1x8x96xf32> to vector<1x8x8xf32>
    %164 = vector.extract_strided_slice %148 {offsets = [0, 0, 40], sizes = [1, 8, 8], strides = [1, 1, 1]} : vector<1x8x96xf32> to vector<1x8x8xf32>
    %165 = vector.extract_strided_slice %148 {offsets = [0, 0, 72], sizes = [1, 8, 8], strides = [1, 1, 1]} : vector<1x8x96xf32> to vector<1x8x8xf32>
    "tpu.trace_start"() <{level = 10 : i32, message = "bsd,btd->bst"}> : () -> ()
    %cst_78 = arith.constant dense<0.000000e+00> : vector<1x8x8xf32>
    %166 = tpu.matmul %163, %164, %cst_78 {dimension_numbers = #tpu.dot_dimension_numbers<[2], [2], [1], [1], [0, 0, 0, 1, 1, 1], [0], [0]>} : vector<1x8x8xf32>, vector<1x8x8xf32>, vector<1x8x8xf32> -> vector<1x8x8xf32>
    "tpu.trace_stop"() : () -> ()
    %cst_79 = arith.constant dense<0xFF800000> : vector<1x8xf32>
    %167 = vector.multi_reduction <maximumf>, %166, %cst_79 [2] : vector<1x8x8xf32> to vector<1x8xf32>
    %168 = vector.shape_cast %167 : vector<1x8xf32> to vector<1x8x1xf32>
    %169 = vector.broadcast %168 : vector<1x8x1xf32> to vector<1x8x8xf32>
    %170 = arith.subf %166, %169 : vector<1x8x8xf32>
    %171 = math.exp %170 : vector<1x8x8xf32>
    %cst_80 = arith.constant dense<0.000000e+00> : vector<1x8xf32>
    %172 = vector.multi_reduction <add>, %171, %cst_80 [2] : vector<1x8x8xf32> to vector<1x8xf32>
    %173 = vector.shape_cast %172 : vector<1x8xf32> to vector<1x8x1xf32>
    %174 = vector.broadcast %173 : vector<1x8x1xf32> to vector<1x8x8xf32>
    %175 = arith.divf %171, %174 : vector<1x8x8xf32>
    "tpu.trace_start"() <{level = 10 : i32, message = "bst,btd->bsd"}> : () -> ()
    %cst_81 = arith.constant dense<0.000000e+00> : vector<1x8x8xf32>
    %176 = tpu.matmul %175, %165, %cst_81 {dimension_numbers = #tpu.dot_dimension_numbers<[2], [1], [1], [2], [0, 0, 0, 1, 1, 2], [0], [0]>} : vector<1x8x8xf32>, vector<1x8x8xf32>, vector<1x8x8xf32> -> vector<1x8x8xf32>
    "tpu.trace_stop"() : () -> ()
    %177 = vector.extract_strided_slice %148 {offsets = [0, 0, 16], sizes = [1, 8, 8], strides = [1, 1, 1]} : vector<1x8x96xf32> to vector<1x8x8xf32>
    %178 = vector.extract_strided_slice %148 {offsets = [0, 0, 48], sizes = [1, 8, 8], strides = [1, 1, 1]} : vector<1x8x96xf32> to vector<1x8x8xf32>
    %179 = vector.extract_strided_slice %148 {offsets = [0, 0, 80], sizes = [1, 8, 8], strides = [1, 1, 1]} : vector<1x8x96xf32> to vector<1x8x8xf32>
    "tpu.trace_start"() <{level = 10 : i32, message = "bsd,btd->bst"}> : () -> ()
    %cst_82 = arith.constant dense<0.000000e+00> : vector<1x8x8xf32>
    %180 = tpu.matmul %177, %178, %cst_82 {dimension_numbers = #tpu.dot_dimension_numbers<[2], [2], [1], [1], [0, 0, 0, 1, 1, 1], [0], [0]>} : vector<1x8x8xf32>, vector<1x8x8xf32>, vector<1x8x8xf32> -> vector<1x8x8xf32>
    "tpu.trace_stop"() : () -> ()
    %cst_83 = arith.constant dense<0xFF800000> : vector<1x8xf32>
    %181 = vector.multi_reduction <maximumf>, %180, %cst_83 [2] : vector<1x8x8xf32> to vector<1x8xf32>
    %182 = vector.shape_cast %181 : vector<1x8xf32> to vector<1x8x1xf32>
    %183 = vector.broadcast %182 : vector<1x8x1xf32> to vector<1x8x8xf32>
    %184 = arith.subf %180, %183 : vector<1x8x8xf32>
    %185 = math.exp %184 : vector<1x8x8xf32>
    %cst_84 = arith.constant dense<0.000000e+00> : vector<1x8xf32>
    %186 = vector.multi_reduction <add>, %185, %cst_84 [2] : vector<1x8x8xf32> to vector<1x8xf32>
    %187 = vector.shape_cast %186 : vector<1x8xf32> to vector<1x8x1xf32>
    %188 = vector.broadcast %187 : vector<1x8x1xf32> to vector<1x8x8xf32>
    %189 = arith.divf %185, %188 : vector<1x8x8xf32>
    "tpu.trace_start"() <{level = 10 : i32, message = "bst,btd->bsd"}> : () -> ()
    %cst_85 = arith.constant dense<0.000000e+00> : vector<1x8x8xf32>
    %190 = tpu.matmul %189, %179, %cst_85 {dimension_numbers = #tpu.dot_dimension_numbers<[2], [1], [1], [2], [0, 0, 0, 1, 1, 2], [0], [0]>} : vector<1x8x8xf32>, vector<1x8x8xf32>, vector<1x8x8xf32> -> vector<1x8x8xf32>
    "tpu.trace_stop"() : () -> ()
    %191 = vector.extract_strided_slice %148 {offsets = [0, 0, 24], sizes = [1, 8, 8], strides = [1, 1, 1]} : vector<1x8x96xf32> to vector<1x8x8xf32>
    %192 = vector.extract_strided_slice %148 {offsets = [0, 0, 56], sizes = [1, 8, 8], strides = [1, 1, 1]} : vector<1x8x96xf32> to vector<1x8x8xf32>
    %193 = vector.extract_strided_slice %148 {offsets = [0, 0, 88], sizes = [1, 8, 8], strides = [1, 1, 1]} : vector<1x8x96xf32> to vector<1x8x8xf32>
    "tpu.trace_start"() <{level = 10 : i32, message = "bsd,btd->bst"}> : () -> ()
    %cst_86 = arith.constant dense<0.000000e+00> : vector<1x8x8xf32>
    %194 = tpu.matmul %191, %192, %cst_86 {dimension_numbers = #tpu.dot_dimension_numbers<[2], [2], [1], [1], [0, 0, 0, 1, 1, 1], [0], [0]>} : vector<1x8x8xf32>, vector<1x8x8xf32>, vector<1x8x8xf32> -> vector<1x8x8xf32>
    "tpu.trace_stop"() : () -> ()
    %cst_87 = arith.constant dense<0xFF800000> : vector<1x8xf32>
    %195 = vector.multi_reduction <maximumf>, %194, %cst_87 [2] : vector<1x8x8xf32> to vector<1x8xf32>
    %196 = vector.shape_cast %195 : vector<1x8xf32> to vector<1x8x1xf32>
    %197 = vector.broadcast %196 : vector<1x8x1xf32> to vector<1x8x8xf32>
    %198 = arith.subf %194, %197 : vector<1x8x8xf32>
    %199 = math.exp %198 : vector<1x8x8xf32>
    %cst_88 = arith.constant dense<0.000000e+00> : vector<1x8xf32>
    %200 = vector.multi_reduction <add>, %199, %cst_88 [2] : vector<1x8x8xf32> to vector<1x8xf32>
    %201 = vector.shape_cast %200 : vector<1x8xf32> to vector<1x8x1xf32>
    %202 = vector.broadcast %201 : vector<1x8x1xf32> to vector<1x8x8xf32>
    %203 = arith.divf %199, %202 : vector<1x8x8xf32>
    "tpu.trace_start"() <{level = 10 : i32, message = "bst,btd->bsd"}> : () -> ()
    %cst_89 = arith.constant dense<0.000000e+00> : vector<1x8x8xf32>
    %204 = tpu.matmul %203, %193, %cst_89 {dimension_numbers = #tpu.dot_dimension_numbers<[2], [1], [1], [2], [0, 0, 0, 1, 1, 2], [0], [0]>} : vector<1x8x8xf32>, vector<1x8x8xf32>, vector<1x8x8xf32> -> vector<1x8x8xf32>
    "tpu.trace_stop"() : () -> ()
    %205 = tpu.concatenate %162, %176, %190, %204 in 2 : vector<1x8x8xf32>, vector<1x8x8xf32>, vector<1x8x8xf32>, vector<1x8x8xf32> -> vector<1x8x32xf32>
    %206 = vector.shape_cast %205 : vector<1x8x32xf32> to vector<8x32xf32>
    %c1_90 = arith.constant 1 : index
    %c0_91 = arith.constant 0 : index
    %c0_92 = arith.constant 0 : index
    %207 = vector.load %arg4[%c1_90, %c0_91, %c0_92] : memref<2x32x32xf32, #tpu.memory_space<vmem>>, vector<1x32x32xf32>
    %208 = vector.shape_cast %207 : vector<1x32x32xf32> to vector<32x32xf32>
    %cst_93 = arith.constant dense<0.000000e+00> : vector<8x32xf32>
    %209 = tpu.matmul %206, %208, %cst_93 {dimension_numbers = #tpu.dot_dimension_numbers<[1], [0], [0], [1], [0, 0, 1, 1], [], []>} : vector<8x32xf32>, vector<32x32xf32>, vector<8x32xf32> -> vector<8x32xf32>
    %c1_94 = arith.constant 1 : index
    %c0_95 = arith.constant 0 : index
    %c0_96 = arith.constant 0 : index
    %210 = vector.load %arg5[%c1_94, %c0_95, %c0_96] : memref<2x1x32xf32, #tpu.memory_space<vmem>>, vector<1x1x32xf32>
    %211 = vector.shape_cast %210 : vector<1x1x32xf32> to vector<1x32xf32>
    %212 = vector.broadcast %211 : vector<1x32xf32> to vector<8x32xf32>
    %213 = arith.addf %209, %212 : vector<8x32xf32>
    %214 = arith.addf %140, %213 : vector<8x32xf32>
    %c1_97 = arith.constant 1 : index
    %c0_98 = arith.constant 0 : index
    %c0_99 = arith.constant 0 : index
    %215 = vector.load %arg6[%c1_97, %c0_98, %c0_99] : memref<2x1x32xf32, #tpu.memory_space<vmem>>, vector<1x1x32xf32>
    %216 = vector.shape_cast %215 : vector<1x1x32xf32> to vector<1x32xf32>
    %c1_100 = arith.constant 1 : index
    %c0_101 = arith.constant 0 : index
    %c0_102 = arith.constant 0 : index
    %217 = vector.load %arg7[%c1_100, %c0_101, %c0_102] : memref<2x1x32xf32, #tpu.memory_space<vmem>>, vector<1x1x32xf32>
    %218 = vector.shape_cast %217 : vector<1x1x32xf32> to vector<1x32xf32>
    %cst_103 = arith.constant dense<0.000000e+00> : vector<8xf32>
    %219 = vector.multi_reduction <add>, %214, %cst_103 [1] : vector<8x32xf32> to vector<8xf32>
    %220 = vector.shape_cast %219 : vector<8xf32> to vector<8x1xf32>
    %cst_104 = arith.constant 3.200000e+01 : f32
    %221 = vector.broadcast %cst_104 : f32 to vector<8x1xf32>
    %222 = arith.divf %220, %221 : vector<8x1xf32>
    %223 = vector.broadcast %222 : vector<8x1xf32> to vector<8x32xf32>
    %224 = arith.subf %214, %223 : vector<8x32xf32>
    %225 = arith.mulf %224, %224 : vector<8x32xf32>
    %cst_105 = arith.constant dense<0.000000e+00> : vector<8xf32>
    %226 = vector.multi_reduction <add>, %225, %cst_105 [1] : vector<8x32xf32> to vector<8xf32>
    %227 = vector.shape_cast %226 : vector<8xf32> to vector<8x1xf32>
    %cst_106 = arith.constant 3.200000e+01 : f32
    %228 = vector.broadcast %cst_106 : f32 to vector<8x1xf32>
    %229 = arith.divf %227, %228 : vector<8x1xf32>
    %cst_107 = arith.constant 9.99999974E-6 : f32
    %230 = vector.broadcast %cst_107 : f32 to vector<8x1xf32>
    %231 = arith.addf %229, %230 : vector<8x1xf32>
    %232 = math.rsqrt %231 : vector<8x1xf32>
    %233 = vector.broadcast %232 : vector<8x1xf32> to vector<8x32xf32>
    %234 = arith.mulf %224, %233 : vector<8x32xf32>
    %235 = vector.broadcast %216 : vector<1x32xf32> to vector<8x32xf32>
    %236 = arith.mulf %234, %235 : vector<8x32xf32>
    %237 = vector.broadcast %218 : vector<1x32xf32> to vector<8x32xf32>
    %238 = arith.addf %236, %237 : vector<8x32xf32>
    %c1_108 = arith.constant 1 : index
    %c0_109 = arith.constant 0 : index
    %c0_110 = arith.constant 0 : index
    %239 = vector.load %arg10[%c1_108, %c0_109, %c0_110] : memref<2x32x64xf32, #tpu.memory_space<vmem>>, vector<1x32x64xf32>
    %240 = vector.shape_cast %239 : vector<1x32x64xf32> to vector<32x64xf32>
    %cst_111 = arith.constant dense<0.000000e+00> : vector<8x64xf32>
    %241 = tpu.matmul %238, %240, %cst_111 {dimension_numbers = #tpu.dot_dimension_numbers<[1], [0], [0], [1], [0, 0, 1, 1], [], []>} : vector<8x32xf32>, vector<32x64xf32>, vector<8x64xf32> -> vector<8x64xf32>
    %c1_112 = arith.constant 1 : index
    %c0_113 = arith.constant 0 : index
    %c0_114 = arith.constant 0 : index
    %242 = vector.load %arg11[%c1_112, %c0_113, %c0_114] : memref<2x1x64xf32, #tpu.memory_space<vmem>>, vector<1x1x64xf32>
    %243 = vector.shape_cast %242 : vector<1x1x64xf32> to vector<1x64xf32>
    %244 = vector.broadcast %243 : vector<1x64xf32> to vector<8x64xf32>
    %245 = arith.addf %241, %244 : vector<8x64xf32>
    %cst_115 = arith.constant 0.000000e+00 : f32
    %246 = vector.broadcast %cst_115 : f32 to vector<8x64xf32>
    %247 = arith.maximumf %245, %246 : vector<8x64xf32>
    %c1_116 = arith.constant 1 : index
    %c0_117 = arith.constant 0 : index
    %c0_118 = arith.constant 0 : index
    %248 = vector.load %arg12[%c1_116, %c0_117, %c0_118] : memref<2x64x32xf32, #tpu.memory_space<vmem>>, vector<1x64x32xf32>
    %249 = vector.shape_cast %248 : vector<1x64x32xf32> to vector<64x32xf32>
    %cst_119 = arith.constant dense<0.000000e+00> : vector<8x32xf32>
    %250 = tpu.matmul %247, %249, %cst_119 {dimension_numbers = #tpu.dot_dimension_numbers<[1], [0], [0], [1], [0, 0, 1, 1], [], []>} : vector<8x64xf32>, vector<64x32xf32>, vector<8x32xf32> -> vector<8x32xf32>
    %c1_120 = arith.constant 1 : index
    %c0_121 = arith.constant 0 : index
    %c0_122 = arith.constant 0 : index
    %251 = vector.load %arg13[%c1_120, %c0_121, %c0_122] : memref<2x1x32xf32, #tpu.memory_space<vmem>>, vector<1x1x32xf32>
    %252 = vector.shape_cast %251 : vector<1x1x32xf32> to vector<1x32xf32>
    %253 = vector.broadcast %252 : vector<1x32xf32> to vector<8x32xf32>
    %254 = arith.addf %250, %253 : vector<8x32xf32>
    %255 = arith.addf %238, %254 : vector<8x32xf32>
    %c1_123 = arith.constant 1 : index
    %c0_124 = arith.constant 0 : index
    %c0_125 = arith.constant 0 : index
    %256 = vector.load %arg8[%c1_123, %c0_124, %c0_125] : memref<2x1x32xf32, #tpu.memory_space<vmem>>, vector<1x1x32xf32>
    %257 = vector.shape_cast %256 : vector<1x1x32xf32> to vector<1x32xf32>
    %c1_126 = arith.constant 1 : index
    %c0_127 = arith.constant 0 : index
    %c0_128 = arith.constant 0 : index
    %258 = vector.load %arg9[%c1_126, %c0_127, %c0_128] : memref<2x1x32xf32, #tpu.memory_space<vmem>>, vector<1x1x32xf32>
    %259 = vector.shape_cast %258 : vector<1x1x32xf32> to vector<1x32xf32>
    %cst_129 = arith.constant dense<0.000000e+00> : vector<8xf32>
    %260 = vector.multi_reduction <add>, %255, %cst_129 [1] : vector<8x32xf32> to vector<8xf32>
    %261 = vector.shape_cast %260 : vector<8xf32> to vector<8x1xf32>
    %cst_130 = arith.constant 3.200000e+01 : f32
    %262 = vector.broadcast %cst_130 : f32 to vector<8x1xf32>
    %263 = arith.divf %261, %262 : vector<8x1xf32>
    %264 = vector.broadcast %263 : vector<8x1xf32> to vector<8x32xf32>
    %265 = arith.subf %255, %264 : vector<8x32xf32>
    %266 = arith.mulf %265, %265 : vector<8x32xf32>
    %cst_131 = arith.constant dense<0.000000e+00> : vector<8xf32>
    %267 = vector.multi_reduction <add>, %266, %cst_131 [1] : vector<8x32xf32> to vector<8xf32>
    %268 = vector.shape_cast %267 : vector<8xf32> to vector<8x1xf32>
    %cst_132 = arith.constant 3.200000e+01 : f32
    %269 = vector.broadcast %cst_132 : f32 to vector<8x1xf32>
    %270 = arith.divf %268, %269 : vector<8x1xf32>
    %cst_133 = arith.constant 9.99999974E-6 : f32
    %271 = vector.broadcast %cst_133 : f32 to vector<8x1xf32>
    %272 = arith.addf %270, %271 : vector<8x1xf32>
    %273 = math.rsqrt %272 : vector<8x1xf32>
    %274 = vector.broadcast %273 : vector<8x1xf32> to vector<8x32xf32>
    %275 = arith.mulf %265, %274 : vector<8x32xf32>
    %276 = vector.broadcast %257 : vector<1x32xf32> to vector<8x32xf32>
    %277 = arith.mulf %275, %276 : vector<8x32xf32>
    %278 = vector.broadcast %259 : vector<1x32xf32> to vector<8x32xf32>
    %279 = arith.addf %277, %278 : vector<8x32xf32>
    %280 = vector.shape_cast %279 : vector<8x32xf32> to vector<1x8x32xf32>
    %cst_134 = arith.constant dense<0.000000e+00> : vector<1x32xf32>
    %281 = vector.multi_reduction <add>, %280, %cst_134 [1] : vector<1x8x32xf32> to vector<1x32xf32>
    %cst_135 = arith.constant 8.000000e+00 : f32
    %282 = vector.broadcast %cst_135 : f32 to vector<1x32xf32>
    %283 = arith.divf %281, %282 : vector<1x32xf32>
    %c0_136 = arith.constant 0 : index
    %c0_137 = arith.constant 0 : index
    %284 = vector.load %arg14[%c0_136, %c0_137] : memref<32x128xf32, #tpu.memory_space<vmem>>, vector<32x128xf32>
    %cst_138 = arith.constant dense<0.000000e+00> : vector<1x128xf32>
    %285 = tpu.matmul %283, %284, %cst_138 {dimension_numbers = #tpu.dot_dimension_numbers<[1], [0], [0], [1], [0, 0, 1, 1], [], []>} : vector<1x32xf32>, vector<32x128xf32>, vector<1x128xf32> -> vector<1x128xf32>
    %c0_139 = arith.constant 0 : index
    %c0_140 = arith.constant 0 : index
    %286 = vector.load %arg15[%c0_139, %c0_140] : memref<1x128xf32, #tpu.memory_space<vmem>>, vector<1x128xf32>
    %287 = arith.addf %285, %286 : vector<1x128xf32>
    %c0_141 = arith.constant 0 : index
    %c0_142 = arith.constant 0 : index
    %c0_143 = arith.constant 0 : index
    %288 = vector.load %arg16[%c0_141, %c0_142, %c0_143] : memref<1x1x128xf32, #tpu.memory_space<vmem>>, vector<1x1x128xf32>
    %289 = vector.shape_cast %288 : vector<1x1x128xf32> to vector<1x128xf32>
    %290 = vector.shape_cast %287 : vector<1x128xf32> to vector<1x1x128xf32>
    tpu.vector_store %arg16[%c0_141, %c0_142, %c0_143], %290 {strides = array<i32>} : memref<1x1x128xf32, #tpu.memory_space<vmem>>, vector<1x1x128xf32>,
    return
  }
  func.func @transform_0(%arg0: i32) -> (i32, i32, i32) {
    %c0_i32 = arith.constant 0 : i32
    %c0_i32_0 = arith.constant 0 : i32
    %c0_i32_1 = arith.constant 0 : i32
    return %arg0, %c0_i32, %c0_i32_0 : i32, i32, i32
  }
  func.func @transform_1(%arg0: i32) -> (i32, i32, i32) {
    %c0_i32 = arith.constant 0 : i32
    %c0_i32_0 = arith.constant 0 : i32
    %c0_i32_1 = arith.constant 0 : i32
    %c0_i32_2 = arith.constant 0 : i32
    return %c0_i32, %c0_i32_0, %c0_i32_1 : i32, i32, i32
  }
  func.func @transform_2(%arg0: i32) -> (i32, i32, i32) {
    %c0_i32 = arith.constant 0 : i32
    %c0_i32_0 = arith.constant 0 : i32
    %c0_i32_1 = arith.constant 0 : i32
    %c0_i32_2 = arith.constant 0 : i32
    return %c0_i32, %c0_i32_0, %c0_i32_1 : i32, i32, i32
  }
  func.func @transform_3(%arg0: i32) -> (i32, i32, i32) {
    %c0_i32 = arith.constant 0 : i32
    %c0_i32_0 = arith.constant 0 : i32
    %c0_i32_1 = arith.constant 0 : i32
    %c0_i32_2 = arith.constant 0 : i32
    return %c0_i32, %c0_i32_0, %c0_i32_1 : i32, i32, i32
  }
  func.func @transform_4(%arg0: i32) -> (i32, i32, i32) {
    %c0_i32 = arith.constant 0 : i32
    %c0_i32_0 = arith.constant 0 : i32
    %c0_i32_1 = arith.constant 0 : i32
    %c0_i32_2 = arith.constant 0 : i32
    return %c0_i32, %c0_i32_0, %c0_i32_1 : i32, i32, i32
  }
  func.func @transform_5(%arg0: i32) -> (i32, i32, i32) {
    %c0_i32 = arith.constant 0 : i32
    %c0_i32_0 = arith.constant 0 : i32
    %c0_i32_1 = arith.constant 0 : i32
    %c0_i32_2 = arith.constant 0 : i32
    return %c0_i32, %c0_i32_0, %c0_i32_1 : i32, i32, i32
  }
  func.func @transform_6(%arg0: i32) -> (i32, i32, i32) {
    %c0_i32 = arith.constant 0 : i32
    %c0_i32_0 = arith.constant 0 : i32
    %c0_i32_1 = arith.constant 0 : i32
    %c0_i32_2 = arith.constant 0 : i32
    return %c0_i32, %c0_i32_0, %c0_i32_1 : i32, i32, i32
  }
  func.func @transform_7(%arg0: i32) -> (i32, i32, i32) {
    %c0_i32 = arith.constant 0 : i32
    %c0_i32_0 = arith.constant 0 : i32
    %c0_i32_1 = arith.constant 0 : i32
    %c0_i32_2 = arith.constant 0 : i32
    return %c0_i32, %c0_i32_0, %c0_i32_1 : i32, i32, i32
  }
  func.func @transform_8(%arg0: i32) -> (i32, i32, i32) {
    %c0_i32 = arith.constant 0 : i32
    %c0_i32_0 = arith.constant 0 : i32
    %c0_i32_1 = arith.constant 0 : i32
    %c0_i32_2 = arith.constant 0 : i32
    return %c0_i32, %c0_i32_0, %c0_i32_1 : i32, i32, i32
  }
  func.func @transform_9(%arg0: i32) -> (i32, i32, i32) {
    %c0_i32 = arith.constant 0 : i32
    %c0_i32_0 = arith.constant 0 : i32
    %c0_i32_1 = arith.constant 0 : i32
    %c0_i32_2 = arith.constant 0 : i32
    return %c0_i32, %c0_i32_0, %c0_i32_1 : i32, i32, i32
  }
  func.func @transform_10(%arg0: i32) -> (i32, i32, i32) {
    %c0_i32 = arith.constant 0 : i32
    %c0_i32_0 = arith.constant 0 : i32
    %c0_i32_1 = arith.constant 0 : i32
    %c0_i32_2 = arith.constant 0 : i32
    return %c0_i32, %c0_i32_0, %c0_i32_1 : i32, i32, i32
  }
  func.func @transform_11(%arg0: i32) -> (i32, i32, i32) {
    %c0_i32 = arith.constant 0 : i32
    %c0_i32_0 = arith.constant 0 : i32
    %c0_i32_1 = arith.constant 0 : i32
    %c0_i32_2 = arith.constant 0 : i32
    return %c0_i32, %c0_i32_0, %c0_i32_1 : i32, i32, i32
  }
  func.func @transform_12(%arg0: i32) -> (i32, i32, i32) {
    %c0_i32 = arith.constant 0 : i32
    %c0_i32_0 = arith.constant 0 : i32
    %c0_i32_1 = arith.constant 0 : i32
    %c0_i32_2 = arith.constant 0 : i32
    return %c0_i32, %c0_i32_0, %c0_i32_1 : i32, i32, i32
  }
  func.func @transform_13(%arg0: i32) -> (i32, i32) {
    %c0_i32 = arith.constant 0 : i32
    %c0_i32_0 = arith.constant 0 : i32
    %c0_i32_1 = arith.constant 0 : i32
    return %c0_i32, %c0_i32_0 : i32, i32
  }
  func.func @transform_14(%arg0: i32) -> (i32, i32) {
    %c0_i32 = arith.constant 0 : i32
    %c0_i32_0 = arith.constant 0 : i32
    %c0_i32_1 = arith.constant 0 : i32
    return %c0_i32, %c0_i32_0 : i32, i32
  }
  func.func @transform_15(%arg0: i32) -> (i32, i32, i32) {
    %c0_i32 = arith.constant 0 : i32
    %c0_i32_0 = arith.constant 0 : i32
    %c0_i32_1 = arith.constant 0 : i32
    return %arg0, %c0_i32, %c0_i32_0 : i32, i32, i32
  }
}

</mosaic_0001>

<bundles_post_ra>
// kernel: transformer_forward.1
= control target key start
LH: loop header
LB: loop body
LE: loop exit
PB: predicated region body
PF: predicated region fallthrough
CT: control target
= control target key end

     0   :  { %s2431_s0 = inlined_call_operand.vmem [shape: f32[2,8,32], index: 0, kind: input, shape index: {}]   ;;  %s2432_s1 = inlined_call_operand.vmem [shape: f32[2,32,96], index: 1, kind: input, shape index: {}]   ;;  %s2433_s2 = inlined_call_operand.vmem [shape: f32[2,1,96], index: 2, kind: input, shape index: {}]   ;;  %s2434_s3 = inlined_call_operand.vmem [shape: f32[2,32,32], index: 3, kind: input, shape index: {}]   ;;  %s2435_s4 = inlined_call_operand.vmem [shape: f32[2,1,32], index: 4, kind: input, shape index: {}]   ;;  %s2436_s5 = inlined_call_operand.vmem [shape: f32[2,1,32], index: 5, kind: input, shape index: {}]   ;;  %s2437_s6 = inlined_call_operand.vmem [shape: f32[2,1,32], index: 6, kind: input, shape index: {}]   ;;  %s2438_s7 = inlined_call_operand.vmem [shape: f32[2,1,32], index: 7, kind: input, shape index: {}]   ;;  %s2439_s8 = inlined_call_operand.vmem [shape: f32[2,1,32], index: 8, kind: input, shape index: {}]   ;;  %s2440_s9 = inlined_call_operand.vmem [shape: f32[2,32,64], index: 9, kind: input, shape index: {}]   ;;  %s2441_s10 = inlined_call_operand.vmem [shape: f32[2,1,64], index: 10, kind: input, shape index: {}]   ;;  %s2442_s11 = inlined_call_operand.vmem [shape: f32[2,64,32], index: 11, kind: input, shape index: {}]   ;;  %s2443_s12 = inlined_call_operand.vmem [shape: f32[2,1,32], index: 12, kind: input, shape index: {}]   ;;  %s2444_s13 = inlined_call_operand.vmem [shape: f32[32,128], index: 13, kind: input, shape index: {}]   ;;  %s2445_s14 = inlined_call_operand.vmem [shape: f32[1,128], index: 14, kind: input, shape index: {}]   ;;  %s2446_s15 = inlined_call_operand.hbm [shape: f32[2,1,128], index: 15, kind: output, shape index: {}]  }
   0x1   :  { %2465 = sst [smem:[#allocation9_spill]] %s2431_s0 }
   0x2   :  { %2466 = sst [smem:[#allocation10_spill]] %s2432_s1 }
   0x3   :  { %20 = vsyncpa [#allocation3], 0 }
   0x4   :  { %22 = vsyncpa [#allocation3 + $0x1], 0  ;;  %s2011_s18 = smov 0   ;;  %s2013_s19 = smov 0  }
   0x5   :  { %s2015_s20 = smov 0   ;;  %s2017_s21 = smov 0  }
   0x6 LB: > { %2467 = sst [smem:[#allocation5_spill]] %s1909_s20  ;;  %s2032_s22 = sadd.s32 4294967295, %s1913_s21   ;;  %s1913_s21 = sphi %s2017_s21, %s2490_s21   ;;  %s1909_s20 = sphi %s2015_s20, %s2492_s20   ;;  %s1905_s19 = sphi %s2013_s19, %s2494_s19   ;;  %s1901_s18 = sphi %s2011_s18, %s2493_s18  }
   0x7   : > { %s1668_s23 = sadd.s32 4294967294, %s1913_s21   ;;  %s2036_s24 = sadd.s32 1, %s1913_s21  }
   0x8   : > { %2468 = sst [smem:[#allocation6_spill]] %s2036_s24  ;;  %s355_s25 = sadd.s32 1, %s1909_s20 }
   0x9   : > { %s352_s26 = ssub.s32 %s1913_s21, %s2036_s24  ;;  %p365_p0 = scmp.ne.s32.totalorder %s1909_s20, %s1905_s19 }
   0xa   : > { %p353_p1 = scmp.eq.s32.totalorder %s352_s26, 0  ;;  %p366_p2 = scmp.eq.s32.totalorder %s2032_s22, 1 }
   0xb   : > { %p371_p3 = scmp.ne.s32.totalorder %s1905_s19, %s1901_s18  ;;  %p372_p4 = scmp.eq.s32.totalorder %s1668_s23, 1 }
   0xc   : > { %s2047_s27 = scalar_select %p353_p1, %s1909_s20, %s355_s25  }
   0xd   : > { %p2049_p5 = por %p366_p2, %p365_p0  ;;  %p2053_p6 = por %p372_p4, %p371_p3 }
   0xe   : > { %2469 = sst [smem:[#allocation7_spill]] %s2047_s27  ;;  %p1671_p7 = scmp.ge.s32.totalorder %s1913_s21, 1 }
   0xf   : > { %s2471_s29 = scalar_select %p2053_p6, 1, 0 }
  0x10   : > { %p439_p8 = scmp.lt.s32.totalorder %s1913_s21, 3 }
  0x11   : > { %2472 = sst [smem:[#allocation8_spill]] %s2471_s29 }
  0x12   : > { %p440_p9 = pnand %p1671_p7, %p439_p8 }
  0x13   : > { %s2473_s1 = sld [smem:[#allocation10_spill]] (!%p440_p9)  ;;  %p485_p10 = scmp.lt.s32.totalorder (!%p440_p9), %s2032_s22, 1 }
  0x14   : > { %443 = sbr.rel (%p440_p9) target bundleno = 4617 (0x1209), region = 80  ;;  %s2474_s0 = sld [smem:[#allocation9_spill]] (!%p440_p9) }
  0x15   : > { %s2456_s20 = smov (!%p440_p9), 88   ;;  %s2464_s24 = smov (!%p440_p9), 64  }
  0x16   : > { %s2459_s29 = smov (!%p440_p9), 120   ;;  %s2458_s26 = smov (!%p440_p9), 80  }
  0x17   : > { %s2455_s16 = smov (!%p440_p9), 112   ;;  %s2451_s23 = smov (!%p440_p9), 40  }
  0x18   : > { %s2453_s25 = smov (!%p440_p9), 56  }
  0x19   : > { %v493_v0 = vld [vmem:[%s2473_s1 + $0x18] sm:$0xff]  ;;  %v492_v1 = vld [vmem:[%s2473_s1 + $0x10] sm:$0xff]  ;;  %v491_v2 = vld [vmem:[%s2473_s1 + $0x8] sm:$0xff]  ;;  %s486_s27 = scalar_select %p485_p10, %s2032_s22, 1  ;;  %vm498_vm0 = vcmask 261120   ;;  %vm525_vm1 = vcmask 64512  }
  0x1a   : > { %514 = vmatpush.msra.mxu0 %v493_v0  ;;  %v490_v3 = vld [vmem:[%s2473_s1] sm:$0xff] }
  0x1b   : > { %s1672_s30 = sshll.u32 %s486_s27, 3  ;;  %v1791_v5 = vld [vmem:[%s2433_s2] ss:$0 sm:$0xff]  ;;  %s2460_s27 = smov 96  }
  0x1c   : > { %515 = vmatpush.msra.mxu0 %v492_v1  ;;  %s488_s17 = scalar_lea.vmem %s2474_s0, %s1672_s30  ;;  %s2454_s30 = smov 72  }
  0x1d   : > { %v2076_v4 = vld [vmem:[%s488_s17] sm:$0xff]  ;;  %s2457_s17 = smov 104  }
  0x1e   : > { %516 = vmatpush.msra.mxu0 %v491_v2 }
  0x20   : > { %517 = vmatpush.msra.mxu0 %v490_v3 }
  0x21   : > { %1673 = vmatmul.msk.f32.vlgmr.msra.gmra.mxu0 %vm498_vm0, %v2076_v4 }
  0x9e   : > { %v519_v6 = vpop.f32.mrf.mxu0 }
  0x9f   : > { %v2083_v7 = vadd.f32 %v1791_v5, %v519_v6 }
  0xa1   : > { %602 = vrot.lane.b32.xlu2 %v2083_v7, %s2456_s20  ;;  %574 = vrot.lane.b32.xlu1 %v2083_v7, %s2464_s24  ;;  %s2475_s24 = smov 64   ;;  %s2477_s20 = smov 120  }
  0xa2   : > { %523 = vrot.lane.b32.xlu0 %v2083_v7, %s2460_s27  ;;  %s2478_s27 = smov 80  }
  0xa9   : > { %600 = vrot.lane.b32.xlu2 %v2083_v7, %s2459_s29  ;;  %s2479_s29 = smov 104  }
  0xb1   : > { %680 = vrot.lane.b32.xlu2 %v2083_v7, %s2458_s26  ;;  %s2480_s26 = smov 88  }
  0xb9   : > { %758 = vrot.lane.b32.xlu2 %v2083_v7, %s2454_s30  ;;  %s2463_s30 = smov 24  }
  0xc1   : > { %678 = vrot.lane.b32.xlu2 %v2083_v7, %s2455_s16  ;;  %s2481_s16 = smov 112  }
  0xfb   : > { %v603_v8 = vpop.permute.xlu2 %602 }
 0x103   : > { %v601_v9 = vpop.permute.xlu2 %600 }
 0x10b   : > { %v681_v10 = vpop.permute.xlu2 %680 }
 0x113   : > { %v759_v11 = vpop.permute.xlu2 %758  ;;  %v575_v12 = vpop.permute.xlu1 %574 }
 0x114   : > { %v524_v13 = vpop.permute.xlu0 %523  ;;  %595 = vmatpush.msra.mxu3 %v575_v12  ;;  %1683 = vmatpush.xpose.msk.msrb.mxu0 %vm525_vm1, %v759_v11 }
 0x115   : > { %1674 = vmatpush.xpose.msk.msra.mxu1 %vm525_vm1, %v524_v13 }
 0x116   : > { %1677 = vmatpush.xpose.msk.msrb.mxu3 %vm525_vm1, %v603_v8 }
 0x118   : > { %1675 = vmatmul.msk.f32.vlgmr.msra.gmra.mxu1 %vm525_vm1, %v2083_v7 }
 0x119   : > { %1680 = vmatpush.xpose.msk.msrb.mxu1 %vm525_vm1, %v681_v10 }
 0x11b   : > { %v679_v14 = vpop.permute.xlu2 %678 }
 0x120   : > { %1681 = vmatmul.msk.f32.vlgmr.msrb.gmra.mxu1 %vm525_vm1, %v679_v14 }
 0x195   : > { %v547_v15 = vpop.f32.mrf.mxu1 }
 0x196   : > { %v550_v16 = vsel %vm525_vm1, %v547_v15, -inf }
 0x197   : > { %551 = vmax.xlane.f32.xlu0 %v550_v16 }
 0x19d   : > { %v703_v22 = vpop.f32.mrf.mxu1 }
 0x19e   : > { %v706_v23 = vsel %vm525_vm1, %v703_v22, -inf }
 0x20a   : > { %v552_v17 = vpop.xlane.xlu0 %551 }
 0x20b   : > { %v553_v18 = vsub.f32 %v547_v15, %v552_v17 }
 0x20d   : > { %v554_v19 = vmul.f32 1.442695, %v553_v18 }
 0x20f   : > { %1807 = vpow2.f32 %v554_v19 }
 0x215   : > { %v1808_v20 = vpop.eup %1807 }
 0x216   : > { %v556_v21 = vsel %vm525_vm1, %v1808_v20, 0.0 }
 0x217   : > { %557 = vadd.xlane.f32.xlu1 %v556_v21 }
 0x230   : > { %756 = vrot.lane.b32.xlu1 %v2083_v7, %s2457_s17  ;;  %s2482_s17 = smov 72  }
 0x25a   : > { %707 = vmax.xlane.f32.xlu1 %v706_v23 }
 0x273   : > { %808 = vrot.lane.b32.xlu1 %v2083_v7, %s2451_s23  ;;  %s2452_s23 = smov 48  }
 0x28a   : > { %v558_v24 = vpop.xlane.xlu1 %557 }
 0x28b   : > { %1809 = vrcp.f32 %v558_v24  ;;  %v570_v28 = vand.u32 2147483648, %v558_v24  ;;  %v568_v30 = vand.u32 2147483647, %v558_v24  ;;  %vm564_vm3 = vweird.f32 %v558_v24 }
 0x28d   : > { %v571_v32 = vor.u32 1.1754944e-38, %v570_v28  ;;  %vm569_vm5 = vcmp.eq.f32.partialorder %v568_v30, 8.507059e+37 }
 0x291   : > { %v1810_v25 = vpop.eup %1809 }
 0x292   : > { %v560_v26 = vmul.f32 %v1810_v25, %v558_v24  ;;  %vm565_vm2 = vweird.f32 %v1810_v25 }
 0x293   : > { %vm566_vm4 = vmor %vm564_vm3, %vm565_vm2 }
 0x294   : > { %v561_v27 = vsub.f32 1.0, %v560_v26 }
 0x296   : > { %v562_v29 = vmul.f32 %v1810_v25, %v561_v27 }
 0x298   : > { %v563_v31 = vadd.f32 %v1810_v25, %v562_v29 }
 0x29a   : > { %v567_v33 = vsel %vm566_vm4, %v1810_v25, %v563_v31  ;;  %vm847_vm4 = vcmask 130048  }
 0x29b   : > { %v572_v34 = vsel %vm569_vm5, %v571_v32, %v567_v33  ;;  %vm849_vm5 = vcmask 195584  }
 0x29c   : > { %v573_v35 = vmul.f32 %v1808_v20, %v572_v34 }
 0x29e   : > { %1676 = vmatmul.msk.f32.vlgmr.msra.gmra.mxu3 %vm525_vm1, %v573_v35 }
 0x2a2   : > { %v757_v36 = vpop.permute.xlu1 %756 }
 0x2a3   : > { %1684 = vmatmul.msk.f32.vlgmr.msrb.gmra.mxu0 %vm525_vm1, %v757_v36  ;;  %v854_v36 = vld [vmem:[%s2434_s3 + $0x18] sm:$0xff] }
 0x2a4   : > { %874 = vmatpush.msra.mxu1 %v854_v36 }
 0x2a6   : > { %1678 = vmatmul.msk.f32.vlgmr.msrb.gmra.mxu3 %vm525_vm1, %v601_v9 }
 0x2cd   : > { %v708_v37 = vpop.xlane.xlu1 %707 }
 0x2ce   : > { %v709_v38 = vsub.f32 %v703_v22, %v708_v37  ;;  %v853_v37 = vld [vmem:[%s2434_s3 + $0x10] sm:$0xff] }
 0x2cf   : > { %875 = vmatpush.msra.mxu1 %v853_v37 }
 0x2d0   : > { %v710_v39 = vmul.f32 1.442695, %v709_v38  ;;  %v852_v38 = vld [vmem:[%s2434_s3 + $0x8] sm:$0xff] }
 0x2d1   : > { %876 = vmatpush.msra.mxu1 %v852_v38 }
 0x2d2   : > { %1811 = vpow2.f32 %v710_v39  ;;  %v851_v39 = vld [vmem:[%s2434_s3] sm:$0xff] }
 0x2d3   : > { %877 = vmatpush.msra.mxu1 %v851_v39 }
 0x2d8   : > { %v2119_v43 = vpop.eup %1811 }
 0x2d9   : > { %v712_v45 = vsel %vm525_vm1, %v2119_v43, 0.0 }
 0x2e5   : > { %v809_v56 = vpop.permute.xlu1 %808 }
 0x320   : > { %v781_v40 = vpop.f32.mrf.mxu0 }
 0x321   : > { %v2116_v41 = vpop.f32.mrf.mxu3  ;;  %v784_v42 = vsel %vm525_vm1, %v781_v40, -inf }
 0x322   : > { %785 = vmax.xlane.f32.xlu0 %v784_v42 }
 0x329   : > { %v625_v44 = vpop.f32.mrf.mxu3 }
 0x32a   : > { %713 = vadd.xlane.f32.xlu0 %v712_v45  ;;  %v628_v46 = vsel %vm525_vm1, %v625_v44, -inf }
 0x32b   : > { %629 = vmax.xlane.f32.xlu2 %v628_v46 }
 0x343   : > { %652 = vrot.lane.b32.xlu2 %v2083_v7, %s2453_s25  ;;  %s2461_s25 = smov 16  }
 0x395   : > { %v786_v47 = vpop.xlane.xlu0 %785 }
 0x396   : > { %v787_v48 = vsub.f32 %v781_v40, %v786_v47  ;;  %v1792_v47 = vld [vmem:[%s2435_s4] ss:$0 sm:$0xff] }
 0x398   : > { %v788_v49 = vmul.f32 1.442695, %v787_v48 }
 0x39a   : > { %1813 = vpow2.f32 %v788_v49 }
 0x39d   : > { %v714_v59 = vpop.xlane.xlu0 %713 }
 0x39e   : > { %v630_v50 = vpop.xlane.xlu2 %629  ;;  %vm720_vm7 = vweird.f32 %v714_v59  ;;  %v726_v10 = vand.u32 2147483648, %v714_v59 }
 0x39f   : > { %v631_v51 = vsub.f32 %v625_v44, %v630_v50 }
 0x3a0   : > { %v2126_v52 = vpop.eup %1813  ;;  %v727_v17 = vor.u32 1.1754944e-38, %v726_v10 }
 0x3a1   : > { %v632_v53 = vmul.f32 1.442695, %v631_v51  ;;  %v790_v54 = vsel %vm525_vm1, %v2126_v52, 0.0  ;;  %v1929_v51 = vmov 32.0  }
 0x3a2   : > { %791 = vadd.xlane.f32.xlu0 %v790_v54 }
 0x3a3   : > { %1815 = vpow2.f32 %v632_v53 }
 0x3a4   : > { %1817 = vrcp.f32 %v714_v59 }
 0x3a6   : > { %v653_v55 = vpop.permute.xlu2 %652 }
 0x3a7   : > { %673 = vmatpush.msra.mxu2 %v653_v55 }
 0x3a9   : > { %829 = vmatpush.msrb.mxu2 %v809_v56  ;;  %v1816_v57 = vpop.eup %1815 }
 0x3aa   : > { %v634_v58 = vsel %vm525_vm1, %v1816_v57, 0.0  ;;  %v1818_v61 = vpop.eup %1817 }
 0x3ab   : > { %635 = vadd.xlane.f32.xlu0 %v634_v58  ;;  %v716_v62 = vmul.f32 %v1818_v61, %v714_v59  ;;  %vm721_vm6 = vweird.f32 %v1818_v61 }
 0x3ac   : > { %vm722_vm8 = vmor %vm720_vm7, %vm721_vm6 }
 0x3ad   : > { %v717_v63 = vsub.f32 1.0, %v716_v62  ;;  %v925_v62 = vld [vmem:[%s2440_s9 + $0x18] sm:$0xff] }
 0x3af   : > { %v718_v2 = vmul.f32 %v1818_v61, %v717_v63  ;;  %v924_v63 = vld [vmem:[%s2440_s9 + $0x10] sm:$0xff] }
 0x3b1   : > { %v719_v6 = vadd.f32 %v1818_v61, %v718_v2  ;;  %v961_v2 = vld [vmem:[%s2442_s11 + $0x38] sm:$0xff] }
 0x3b2   : > { %978 = vmatpush.msra.mxu0 %v961_v2 }
 0x3b3   : > { %v723_v12 = vsel %vm722_vm8, %v1818_v61, %v719_v6 }
 0x3bf   : > { %730 = vrot.lane.b32.xlu0 %v2083_v7, %s2452_s23  ;;  %v724_v7 = vand.u32 2147483647, %v714_v59  ;;  %s2462_s23 = smov 8  }
 0x3c1   : > { %vm725_vm10 = vcmp.eq.f32.partialorder %v724_v7, 8.507059e+37  ;;  %v957_v7 = vld [vmem:[%s2442_s11 + $0x18] sm:$0xff] }
 0x3c2   : > { %v728_v19 = vsel %vm725_vm10, %v727_v17, %v723_v12  ;;  %v1793_v17 = vld [vmem:[%s2436_s5] ss:$0 sm:$0xff]  ;;  %vm966_vm10 = vcmask 523264  }
 0x3c3   : > { %v729_v28 = vmul.f32 %v2119_v43, %v728_v19 }
 0x415   : > { %v792_v60 = vpop.xlane.xlu0 %791 }
 0x416   : > { %1819 = vrcp.f32 %v792_v60  ;;  %v804_v23 = vand.u32 2147483648, %v792_v60  ;;  %vm798_vm15 = vweird.f32 %v792_v60  ;;  %v802_v25 = vand.u32 2147483647, %v792_v60 }
 0x418   : > { %v805_v30 = vor.u32 1.1754944e-38, %v804_v23  ;;  %vm803_vm3 = vcmp.eq.f32.partialorder %v802_v25, 8.507059e+37  ;;  %v956_v23 = vld [vmem:[%s2442_s11 + $0x10] sm:$0xff]  ;;  %v954_v25 = vld [vmem:[%s2442_s11] sm:$0xff] }
 0x41c   : > { %v1820_v1 = vpop.eup %1819 }
 0x41d   : > { %v794_v3 = vmul.f32 %v1820_v1, %v792_v60  ;;  %vm799_vm13 = vweird.f32 %v1820_v1 }
 0x41e   : > { %v636_v0 = vpop.xlane.xlu0 %635  ;;  %vm800_vm2 = vmor %vm798_vm15, %vm799_vm13 }
 0x41f   : > { %1821 = vrcp.f32 %v636_v0  ;;  %v795_v8 = vsub.f32 1.0, %v794_v3  ;;  %v648_v13 = vand.u32 2147483648, %v636_v0  ;;  %v646_v16 = vand.u32 2147483647, %v636_v0  ;;  %v960_v3 = vld [vmem:[%s2442_s11 + $0x30] sm:$0xff] }
 0x420   : > { %vm642_vm11 = vweird.f32 %v636_v0  ;;  %1823 = vrcp.f32 %v1929_v51  ;;  %979 = vmatpush.msra.mxu0 %v960_v3 }
 0x421   : > { %v796_v14 = vmul.f32 %v1820_v1, %v795_v8  ;;  %v649_v20 = vor.u32 1.1754944e-38, %v648_v13  ;;  %vm647_vm14 = vcmp.eq.f32.partialorder %v646_v16, 8.507059e+37 }
 0x423   : > { %v797_v21 = vadd.f32 %v1820_v1, %v796_v14 }
 0x425   : > { %v1822_v5 = vpop.eup %1821  ;;  %v801_v29 = vsel %vm800_vm2, %v1820_v1, %v797_v21  ;;  %v922_v1 = vld [vmem:[%s2440_s9] sm:$0xff] }
 0x426   : > { %v638_v9 = vmul.f32 %v1822_v5, %v636_v0  ;;  %vm643_vm9 = vweird.f32 %v1822_v5  ;;  %v806_v31 = vsel %vm803_vm3, %v805_v30, %v801_v29  ;;  %v923_v0 = vld [vmem:[%s2440_s9 + $0x8] sm:$0xff]  ;;  %v1796_v30 = vld [vmem:[%s2443_s12] ss:$0 sm:$0xff] }
 0x427   : > { %vm644_vm12 = vmor %vm642_vm11, %vm643_vm9  ;;  %v807_v32 = vmul.f32 %v2126_v52, %v806_v31  ;;  %v1824_v52 = vpop.eup %1823 }
 0x428   : > { %v639_v11 = vsub.f32 1.0, %v638_v9  ;;  %v889_v53 = vmul.f32 32.0, %v1824_v52  ;;  %vm893_vm6 = vweird.f32 %v1824_v52  ;;  %v958_v9 = vld [vmem:[%s2442_s11 + $0x20] sm:$0xff] }
 0x42a   : > { %v640_v15 = vmul.f32 %v1822_v5, %v639_v11  ;;  %v890_v54 = vsub.f32 1.0, %v889_v53  ;;  %v1797_v53 = vld [vmem:[%s2438_s7] ss:$0 sm:$0xff] }
 0x42c   : > { %v641_v18 = vadd.f32 %v1822_v5, %v640_v15  ;;  %v891_v55 = vmul.f32 %v1824_v52, %v890_v54 }
 0x42e   : > { %v645_v22 = vsel %vm644_vm12, %v1822_v5, %v641_v18  ;;  %v892_v56 = vadd.f32 %v1824_v52, %v891_v55  ;;  %v959_v5 = vld [vmem:[%s2442_s11 + $0x28] sm:$0xff] }
 0x42f   : > { %v650_v24 = vsel %vm647_vm14, %v649_v20, %v645_v22  ;;  %980 = vmatpush.msra.mxu0 %v959_v5  ;;  %v1794_v20 = vld [vmem:[%s2437_s6] ss:$0 sm:$0xff] }
 0x430   : > { %v651_v26 = vmul.f32 %v1816_v57, %v650_v24  ;;  %v2163_v57 = vsel %vm893_vm6, %v1824_v52, %v892_v56  ;;  %v955_v24 = vld [vmem:[%s2442_s11 + $0x8] sm:$0xff]  ;;  %v1798_v56 = vld [vmem:[%s2439_s8] ss:$0 sm:$0xff] }
 0x431   : > { %v731_v27 = vpop.permute.xlu0 %730  ;;  %981 = vmatpush.msra.mxu0 %v958_v9 }
 0x432   : > { %1679 = vmatmul.msk.f32.vlgmr.msra.gmra.mxu2 %vm525_vm1, %v651_v26  ;;  %751 = vmatpush.msra.mxu3 %v731_v27  ;;  %v1795_v26 = vld [vmem:[%s2441_s10] ss:$0 sm:$0xff] }
 0x433   : > { %1682 = vmatmul.msk.f32.vlgmr.msra.gmra.mxu3 %vm525_vm1, %v729_v28  ;;  %982 = vmatpush.msra.mxu0 %v957_v7 }
 0x434   : > { %945 = vmatpush.msrb.mxu3 %v925_v62 }
 0x435   : > { %983 = vmatpush.msra.mxu0 %v956_v23 }
 0x436   : > { %946 = vmatpush.msrb.mxu3 %v924_v63 }
 0x437   : > { %984 = vmatpush.msra.mxu0 %v955_v24 }
 0x438   : > { %947 = vmatpush.msrb.mxu3 %v923_v0 }
 0x439   : > { %985 = vmatpush.msra.mxu0 %v954_v25 }
 0x43a   : > { %1685 = vmatmul.msk.f32.vlgmr.msrb.gmra.mxu2 %vm525_vm1, %v807_v32  ;;  %948 = vmatpush.msrb.mxu3 %v922_v1 }
 0x4b5   : > { %v675_v33 = vpop.f32.mrf.mxu2 }
 0x4b6   : > { %835 = vrot.lane.b32.xlu0 %v675_v33, %s2462_s23  ;;  %v753_v34 = vpop.f32.mrf.mxu3  ;;  %s2483_s23 = smov 56  }
 0x4b7   : > { %839 = vrot.lane.b32.xlu2 %v753_v34, %s2461_s25  ;;  %s2484_s25 = smov 40  }
 0x4bd   : > { %v831_v35 = vpop.f32.mrf.mxu2 }
 0x4be   : > { %843 = vrot.lane.b32.xlu1 %v831_v35, %s2463_s30  ;;  %s2476_s30 = smov 96  }
 0x511   : > { %v840_v43 = vpop.permute.xlu2 %839 }
 0x528   : > { %v836_v40 = vpop.permute.xlu0 %835 }
 0x529   : > { %v846_v42 = vsel %vm525_vm1, %v2116_v41, %v836_v40  ;;  %v1692_v40 = vld [vmem:[%s2473_s1 + $0x38] sm:$0xff] }
 0x52a   : > { %v848_v44 = vsel %vm847_vm4, %v846_v42, %v840_v43  ;;  %1048 = vmatpush.msra.mxu2 %v1692_v40  ;;  %v1691_v42 = vld [vmem:[%s2473_s1 + $0x30] sm:$0xff]  ;;  %v1690_v43 = vld [vmem:[%s2473_s1 + $0x28] sm:$0xff] }
 0x52c   : > { %1049 = vmatpush.msra.mxu2 %v1691_v42 }
 0x52e   : > { %1050 = vmatpush.msra.mxu2 %v1690_v43 }
 0x530   : > { %v844_v45 = vpop.permute.xlu1 %843 }
 0x531   : > { %v850_v46 = vsel %vm849_vm5, %v848_v44, %v844_v45  ;;  %v1689_v44 = vld [vmem:[%s2473_s1 + $0x20] sm:$0xff] }
 0x532   : > { %1686 = vmatmul.msk.f32.vlgmr.msra.gmra.mxu1 %vm498_vm0, %v850_v46  ;;  %1051 = vmatpush.msra.mxu2 %v1689_v44 }
 0x5af   : > { %v879_v48 = vpop.f32.mrf.mxu1 }
 0x5b0   : > { %v880_v49 = vadd.f32 %v1792_v47, %v879_v48 }
 0x5b2   : > { %v882_v50 = vadd.f32 %v880_v49, %v2076_v4 }
 0x5b4   : > { %v885_v41 = vsel %vm498_vm0, %v882_v50, 0.0 }
 0x5b5   : > { %886 = vadd.xlane.f32.xlu0 %v885_v41 }
 0x628   : > { %v887_v58 = vpop.xlane.xlu0 %886 }
 0x629   : > { %v895_v59 = vmul.f32 %v2163_v57, %v887_v58 }
 0x62b   : > { %v896_v60 = vsub.f32 %v882_v50, %v895_v59 }
 0x62d   : > { %v897_v61 = vmul.f32 %v896_v60, %v896_v60 }
 0x62f   : > { %v898_v4 = vsel %vm498_vm0, %v897_v61, 0.0 }
 0x630   : > { %899 = vadd.xlane.f32.xlu2 %v898_v4 }
 0x6a3   : > { %v900_v6 = vpop.xlane.xlu2 %899 }
 0x6a4   : > { %v901_v8 = vmul.f32 %v900_v6, %v2163_v57 }
 0x6a6   : > { %v902_v10 = vadd.f32 1e-05, %v901_v8 }
 0x6a8   : > { %1825 = vrsqrt.f32 %v902_v10  ;;  %vm909_vm8 = vweird.f32 %v902_v10 }
 0x6ae   : > { %v1826_v11 = vpop.eup %1825 }
 0x6af   : > { %v904_v12 = vmul.f32 %v1826_v11, %v902_v10  ;;  %vm910_vm7 = vweird.f32 %v1826_v11 }
 0x6b0   : > { %vm911_vm9 = vmor %vm909_vm8, %vm910_vm7 }
 0x6b1   : > { %v905_v13 = vmul.f32 %v1826_v11, %v904_v12 }
 0x6b3   : > { %v906_v14 = vmul.f32 0.5, %v905_v13 }
 0x6b5   : > { %v907_v15 = vsub.f32 1.5, %v906_v14 }
 0x6b7   : > { %v908_v16 = vmul.f32 %v1826_v11, %v907_v15 }
 0x6b9   : > { %v912_v18 = vsel %vm911_vm9, %v1826_v11, %v908_v16 }
 0x6ba   : > { %v913_v19 = vmul.f32 %v912_v18, %v896_v60  ;;  %v1799_v60 = vld [vmem:[%s2433_s2 + $0x1] ss:$0 sm:$0xff] }
 0x6bc   : > { %v917_v21 = vmul.f32 %v1793_v17, %v913_v19 }
 0x6be   : > { %v921_v22 = vadd.f32 %v1794_v20, %v917_v21 }
 0x6c0   : > { %1687 = vmatmul.msk.f32.vlgmr.msrb.gmra.mxu3 %vm498_vm0, %v921_v22 }
 0x743   : > { %v950_v27 = vpop.f32.mrf.mxu3 }
 0x744   : > { %v951_v28 = vadd.f32 %v1795_v26, %v950_v27 }
 0x746   : > { %v953_v29 = vmax.f32 %v951_v28, 0.0 }
 0x748   : > { %1688 = vmatmul.msk.f32.vlgmr.msra.gmra.mxu0 %vm966_vm10, %v953_v29 }
 0x7c5   : > { %v987_v31 = vpop.f32.mrf.mxu0 }
 0x7c6   : > { %v988_v32 = vadd.f32 %v1796_v30, %v987_v31 }
 0x7c8   : > { %v990_v33 = vadd.f32 %v988_v32, %v921_v22 }
 0x7ca   : > { %v993_v34 = vsel %vm498_vm0, %v990_v33, 0.0 }
 0x7cb   : > { %994 = vadd.xlane.f32.xlu1 %v993_v34 }
 0x83e   : > { %v995_v35 = vpop.xlane.xlu1 %994 }
 0x83f   : > { %v996_v36 = vmul.f32 %v995_v35, %v2163_v57 }
 0x841   : > { %v997_v37 = vsub.f32 %v990_v33, %v996_v36 }
 0x843   : > { %v998_v38 = vmul.f32 %v997_v37, %v997_v37 }
 0x845   : > { %v999_v39 = vsel %vm498_vm0, %v998_v38, 0.0 }
 0x846   : > { %1000 = vadd.xlane.f32.xlu0 %v999_v39 }
 0x8b9   : > { %v1001_v45 = vpop.xlane.xlu0 %1000 }
 0x8ba   : > { %v1002_v46 = vmul.f32 %v1001_v45, %v2163_v57 }
 0x8bc   : > { %v1003_v47 = vadd.f32 1e-05, %v1002_v46 }
 0x8be   : > { %1827 = vrsqrt.f32 %v1003_v47  ;;  %vm1010_vm12 = vweird.f32 %v1003_v47 }
 0x8c4   : > { %v1828_v48 = vpop.eup %1827 }
 0x8c5   : > { %v1005_v49 = vmul.f32 %v1828_v48, %v1003_v47  ;;  %vm1011_vm11 = vweird.f32 %v1828_v48 }
 0x8c6   : > { %vm1012_vm13 = vmor %vm1010_vm12, %vm1011_vm11 }
 0x8c7   : > { %v1006_v50 = vmul.f32 %v1828_v48, %v1005_v49 }
 0x8c9   : > { %v1007_v41 = vmul.f32 0.5, %v1006_v50 }
 0x8cb   : > { %v1008_v51 = vsub.f32 1.5, %v1007_v41 }
 0x8cd   : > { %v1009_v52 = vmul.f32 %v1828_v48, %v1008_v51 }
 0x8cf   : > { %v1013_v54 = vsel %vm1012_vm13, %v1828_v48, %v1009_v52 }
 0x8d0   : > { %v1014_v55 = vmul.f32 %v1013_v54, %v997_v37 }
 0x8d2   : > { %v1018_v58 = vmul.f32 %v1797_v53, %v1014_v55 }
 0x8d4   : > { %v2240_v59 = vadd.f32 %v1798_v56, %v1018_v58 }
 0x8d6   : > { %1694 = vmatmul.msk.f32.vlgmr.msra.gmra.mxu2 %vm498_vm0, %v2240_v59 }
 0x959   : > { %v1053_v61 = vpop.f32.mrf.mxu2 }
 0x95a   : > { %v2247_v4 = vadd.f32 %v1799_v60, %v1053_v61 }
 0x95c   : > { %1107 = vrot.lane.b32.xlu0 %v2247_v4, %s2475_s24  ;;  %1057 = vrot.lane.b32.xlu2 %v2247_v4, %s2476_s30  ;;  %s2485_s24 = smov 48   ;;  %s2486_s30 = smov 8  }
 0x964   : > { %1133 = vrot.lane.b32.xlu2 %v2247_v4, %s2477_s20  ;;  %s2487_s20 = smov 24  }
 0x96c   : > { %1213 = vrot.lane.b32.xlu2 %v2247_v4, %s2478_s27  ;;  %s2488_s27 = smov 16  }
 0x974   : > { %1289 = vrot.lane.b32.xlu2 %v2247_v4, %s2479_s29 }
 0x9b6   : > { %v1058_v62 = vpop.permute.xlu2 %1057 }
 0x9b7   : > { %1695 = vmatpush.xpose.msk.msrb.mxu1 %vm525_vm1, %v1058_v62 }
 0x9ba   : > { %1696 = vmatmul.msk.f32.vlgmr.msrb.gmra.mxu1 %vm525_vm1, %v2247_v4 }
 0x9be   : > { %v1134_v63 = vpop.permute.xlu2 %1133 }
 0x9c6   : > { %v1214_v1 = vpop.permute.xlu2 %1213 }
 0x9ce   : > { %v1108_v0 = vpop.permute.xlu0 %1107  ;;  %v1290_v24 = vpop.permute.xlu2 %1289 }
 0x9cf   : > { %1128 = vmatpush.msra.mxu3 %v1108_v0 }
 0x9d1   : > { %1701 = vmatpush.xpose.msk.msrb.mxu3 %vm525_vm1, %v1214_v1 }
 0xa37   : > { %v1080_v2 = vpop.f32.mrf.mxu1 }
 0xa38   : > { %v1083_v3 = vsel %vm525_vm1, %v1080_v2, -inf }
 0xa39   : > { %1084 = vmax.xlane.f32.xlu1 %v1083_v3 }
 0xa52   : > { %1135 = vrot.lane.b32.xlu1 %v2247_v4, %s2480_s26 }
 0xa5a   : > { %1211 = vrot.lane.b32.xlu1 %v2247_v4, %s2481_s16 }
 0xaac   : > { %v1085_v5 = vpop.xlane.xlu1 %1084 }
 0xaad   : > { %v1086_v6 = vsub.f32 %v1080_v2, %v1085_v5 }
 0xaaf   : > { %v1087_v8 = vmul.f32 1.442695, %v1086_v6 }
 0xab1   : > { %1829 = vpow2.f32 %v1087_v8 }
 0xab7   : > { %v1830_v9 = vpop.eup %1829 }
 0xab8   : > { %v1089_v10 = vsel %vm525_vm1, %v1830_v9, 0.0 }
 0xab9   : > { %1090 = vadd.xlane.f32.xlu0 %v1089_v10 }
 0xac4   : > { %v1136_v7 = vpop.permute.xlu1 %1135 }
 0xac5   : > { %1698 = vmatpush.xpose.msk.msrb.mxu2 %vm525_vm1, %v1136_v7 }
 0xac8   : > { %1699 = vmatmul.msk.f32.vlgmr.msrb.gmra.mxu2 %vm525_vm1, %v1134_v63 }
 0xacc   : > { %v1212_v25 = vpop.permute.xlu1 %1211 }
 0xacd   : > { %1291 = vrot.lane.b32.xlu0 %v2247_v4, %s2482_s17 }
 0xb2c   : > { %v1091_v11 = vpop.xlane.xlu0 %1090 }
 0xb2d   : > { %1831 = vrcp.f32 %v1091_v11  ;;  %v1103_v15 = vand.u32 2147483648, %v1091_v11  ;;  %v1101_v17 = vand.u32 2147483647, %v1091_v11  ;;  %vm1097_vm15 = vweird.f32 %v1091_v11 }
 0xb2f   : > { %v1104_v19 = vor.u32 1.1754944e-38, %v1103_v15  ;;  %vm1102_vm3 = vcmp.eq.f32.partialorder %v1101_v17, 8.507059e+37 }
 0xb33   : > { %v1832_v12 = vpop.eup %1831 }
 0xb34   : > { %v1093_v13 = vmul.f32 %v1832_v12, %v1091_v11  ;;  %vm1098_vm14 = vweird.f32 %v1832_v12 }
 0xb35   : > { %vm1099_vm2 = vmor %vm1097_vm15, %vm1098_vm14 }
 0xb36   : > { %v1094_v14 = vsub.f32 1.0, %v1093_v13 }
 0xb38   : > { %v1095_v16 = vmul.f32 %v1832_v12, %v1094_v14 }
 0xb3a   : > { %v1096_v18 = vadd.f32 %v1832_v12, %v1095_v16 }
 0xb3c   : > { %v1100_v20 = vsel %vm1099_vm2, %v1832_v12, %v1096_v18 }
 0xb3d   : > { %v1105_v21 = vsel %vm1102_vm3, %v1104_v19, %v1100_v20 }
 0xb3e   : > { %v1106_v22 = vmul.f32 %v1830_v9, %v1105_v21 }
 0xb3f   : > { %v1292_v23 = vpop.permute.xlu0 %1291 }
 0xb40   : > { %1697 = vmatmul.msk.f32.vlgmr.msra.gmra.mxu3 %vm525_vm1, %v1106_v22  ;;  %1704 = vmatpush.xpose.msk.msra.mxu2 %vm525_vm1, %v1292_v23 }
 0xb43   : > { %1705 = vmatmul.msk.f32.vlgmr.msra.gmra.mxu2 %vm525_vm1, %v1290_v24 }
 0xb48   : > { %1702 = vmatmul.msk.f32.vlgmr.msrb.gmra.mxu3 %vm525_vm1, %v1212_v25 }
 0xb4b   : > { %v1158_v26 = vpop.f32.mrf.mxu2 }
 0xb4c   : > { %v1161_v27 = vsel %vm525_vm1, %v1158_v26, -inf }
 0xb4d   : > { %1162 = vmax.xlane.f32.xlu0 %v1161_v27 }
 0xbc0   : > { %v1163_v28 = vpop.xlane.xlu0 %1162 }
 0xbc1   : > { %v1164_v29 = vsub.f32 %v1158_v26, %v1163_v28  ;;  %v1710_v28 = vld [vmem:[%s2434_s3 + $0x38] sm:$0xff] }
 0xbc2   : > { %1407 = vmatpush.msra.mxu3 %v1710_v28  ;;  %v1573_v28 = vld [vmem:[%s2444_s13 + $0x10] sm:$0xff] }
 0xbc3   : > { %v1165_v30 = vmul.f32 1.442695, %v1164_v29  ;;  %v2278_v31 = vpop.f32.mrf.mxu3  ;;  %v1709_v29 = vld [vmem:[%s2434_s3 + $0x30] sm:$0xff] }
 0xbc4   : > { %1408 = vmatpush.msra.mxu3 %v1709_v29 }
 0xbc5   : > { %1833 = vpow2.f32 %v1165_v30  ;;  %v1708_v30 = vld [vmem:[%s2434_s3 + $0x28] sm:$0xff] }
 0xbc6   : > { %v1314_v32 = vpop.f32.mrf.mxu2  ;;  %1409 = vmatpush.msra.mxu3 %v1708_v30  ;;  %v1572_v30 = vld [vmem:[%s2444_s13 + $0x8] sm:$0xff] }
 0xbc7   : > { %v1317_v33 = vsel %vm525_vm1, %v1314_v32, -inf }
 0xbc8   : > { %1318 = vmax.xlane.f32.xlu2 %v1317_v33 }
 0xbcb   : > { %v1834_v34 = vpop.eup %1833  ;;  %v1236_v35 = vpop.f32.mrf.mxu3 }
 0xbcc   : > { %v1167_v36 = vsel %vm525_vm1, %v1834_v34, 0.0  ;;  %v1239_v37 = vsel %vm525_vm1, %v1236_v35, -inf }
 0xbcd   : > { %1168 = vadd.xlane.f32.xlu0 %v1167_v36  ;;  %1240 = vmax.xlane.f32.xlu1 %v1239_v37 }
 0xbe1   : > { %1185 = vrot.lane.b32.xlu0 %v2247_v4, %s2483_s23  ;;  %s483_s23 = sand.u32 1, %s1905_s19  }
 0xbe2   : > { %s484_s29 = scalar_lea.vmem [#allocation2], %s483_s23  ;;  %s1601_s17 = scalar_lea.sflag [#allocation3], %s483_s23 }
 0xbe3   : > { %s1611_s26 = sshll.u32 %s484_s29, 4  ;;  %s1612_s26 = int_to_ptr.vmem [resolvable:$true] %s1611_s26 }
 0xc3b   : > { %v1319_v38 = vpop.xlane.xlu2 %1318 }
 0xc3c   : > { %v1320_v39 = vsub.f32 %v1314_v32, %v1319_v38  ;;  %v1707_v32 = vld [vmem:[%s2434_s3 + $0x20] sm:$0xff] }
 0xc3d   : > { %1410 = vmatpush.msra.mxu3 %v1707_v32 }
 0xc3e   : > { %v1321_v40 = vmul.f32 1.442695, %v1320_v39  ;;  %v1800_v39 = vld [vmem:[%s2435_s4 + $0x1] ss:$0 sm:$0xff] }
 0xc40   : > { %1835 = vpow2.f32 %v1321_v40  ;;  %v1169_v42 = vpop.xlane.xlu0 %1168  ;;  %v1241_v43 = vpop.xlane.xlu1 %1240 }
 0xc41   : > { %1837 = vrcp.f32 %v1169_v42  ;;  %v1242_v44 = vsub.f32 %v1236_v35, %v1241_v43  ;;  %v1181_v41 = vand.u32 2147483648, %v1169_v42  ;;  %v1179_v53 = vand.u32 2147483647, %v1169_v42 }
 0xc42   : > { %vm1175_vm7 = vweird.f32 %v1169_v42 }
 0xc43   : > { %v1243_v45 = vmul.f32 1.442695, %v1242_v44  ;;  %v1182_v56 = vor.u32 1.1754944e-38, %v1181_v41  ;;  %vm1180_vm9 = vcmp.eq.f32.partialorder %v1179_v53, 8.507059e+37  ;;  %v1715_v41 = vld [vmem:[%s2440_s9 + $0x20] sm:$0xff]  ;;  %v1726_v53 = vld [vmem:[%s2442_s11 + $0x68] sm:$0xff] }
 0xc45   : > { %1839 = vpow2.f32 %v1243_v45 }
 0xc46   : > { %v1836_v46 = vpop.eup %1835 }
 0xc47   : > { %v1838_v47 = vpop.eup %1837  ;;  %v1323_v48 = vsel %vm525_vm1, %v1836_v46, 0.0 }
 0xc48   : > { %v1171_v49 = vmul.f32 %v1838_v47, %v1169_v42  ;;  %1324 = vadd.xlane.f32.xlu2 %v1323_v48  ;;  %vm1176_vm6 = vweird.f32 %v1838_v47 }
 0xc49   : > { %vm1177_vm8 = vmor %vm1175_vm7, %vm1176_vm6 }
 0xc4a   : > { %v1172_v50 = vsub.f32 1.0, %v1171_v49  ;;  %v1718_v49 = vld [vmem:[%s2440_s9 + $0x38] sm:$0xff] }
 0xc4b   : > { %v1840_v51 = vpop.eup %1839 }
 0xc4c   : > { %v1173_v52 = vmul.f32 %v1838_v47, %v1172_v50  ;;  %v1245_v54 = vsel %vm525_vm1, %v1840_v51, 0.0  ;;  %v1716_v50 = vld [vmem:[%s2440_s9 + $0x28] sm:$0xff] }
 0xc4d   : > { %1246 = vadd.xlane.f32.xlu1 %v1245_v54 }
 0xc4e   : > { %v1174_v55 = vadd.f32 %v1838_v47, %v1173_v52  ;;  %v1727_v52 = vld [vmem:[%s2442_s11 + $0x70] sm:$0xff] }
 0xc50   : > { %v1178_v58 = vsel %vm1177_vm8, %v1838_v47, %v1174_v55 }
 0xc51   : > { %v1183_v60 = vsel %vm1180_vm9, %v1182_v56, %v1178_v58  ;;  %v1725_v56 = vld [vmem:[%s2442_s11 + $0x60] sm:$0xff] }
 0xc52   : > { %v1184_v61 = vmul.f32 %v1834_v34, %v1183_v60  ;;  %v1724_v60 = vld [vmem:[%s2442_s11 + $0x58] sm:$0xff] }
 0xc53   : > { %v1186_v62 = vpop.permute.xlu0 %1185 }
 0xc54   : > { %1206 = vmatpush.msra.mxu1 %v1186_v62 }
 0xc55   : > { %1700 = vmatmul.msk.f32.vlgmr.msra.gmra.mxu1 %vm525_vm1, %v1184_v61 }
 0xc60   : > { %1341 = vrot.lane.b32.xlu2 %v2247_v4, %s2484_s25 }
 0xc66   : > { %1263 = vrot.lane.b32.xlu1 %v2247_v4, %s2485_s24  ;;  %s1871_s24 = scalar_lea.hbm %s2446_s15, 2 }
 0xcbb   : > { %v1325_v63 = vpop.xlane.xlu2 %1324 }
 0xcbc   : > { %1841 = vrcp.f32 %v1325_v63  ;;  %v1337_v6 = vand.u32 2147483648, %v1325_v63  ;;  %v1335_v9 = vand.u32 2147483647, %v1325_v63  ;;  %vm1331_vm12 = vweird.f32 %v1325_v63 }
 0xcbe   : > { %v1338_v12 = vor.u32 1.1754944e-38, %v1337_v6  ;;  %vm1336_vm14 = vcmp.eq.f32.partialorder %v1335_v9, 8.507059e+37 }
 0xcc0   : > { %v1247_v0 = vpop.xlane.xlu1 %1246 }
 0xcc1   : > { %1843 = vrcp.f32 %v1247_v0  ;;  %v1259_v18 = vand.u32 2147483648, %v1247_v0  ;;  %vm1253_vm2 = vweird.f32 %v1247_v0  ;;  %v1257_v19 = vand.u32 2147483647, %v1247_v0 }
 0xcc2   : > { %v1842_v1 = vpop.eup %1841 }
 0xcc3   : > { %v1327_v2 = vmul.f32 %v1842_v1, %v1325_v63  ;;  %v1342_v3 = vpop.permute.xlu2 %1341  ;;  %vm1332_vm11 = vweird.f32 %v1842_v1  ;;  %v1260_v22 = vor.u32 1.1754944e-38, %v1259_v18  ;;  %vm1258_vm6 = vcmp.eq.f32.partialorder %v1257_v19, 8.507059e+37 }
 0xcc4   : > { %1362 = vmatpush.msrb.mxu1 %v1342_v3  ;;  %vm1333_vm13 = vmor %vm1331_vm12, %vm1332_vm11  ;;  %v1801_v3 = vld [vmem:[%s2436_s5 + $0x1] ss:$0 sm:$0xff] }
 0xcc5   : > { %v1328_v5 = vsub.f32 1.0, %v1327_v2 }
 0xcc7   : > { %v1329_v8 = vmul.f32 %v1842_v1, %v1328_v5  ;;  %v1844_v10 = vpop.eup %1843 }
 0xcc8   : > { %v1249_v11 = vmul.f32 %v1844_v10, %v1247_v0  ;;  %vm1254_vm15 = vweird.f32 %v1844_v10 }
 0xcc9   : > { %v1330_v7 = vadd.f32 %v1842_v1, %v1329_v8  ;;  %vm1255_vm3 = vmor %vm1253_vm2, %vm1254_vm15  ;;  %v1802_v8 = vld [vmem:[%s2437_s6 + $0x1] ss:$0 sm:$0xff] }
 0xcca   : > { %v1250_v13 = vsub.f32 1.0, %v1249_v11  ;;  %v1722_v11 = vld [vmem:[%s2442_s11 + $0x48] sm:$0xff] }
 0xccb   : > { %v1334_v4 = vsel %vm1333_vm13, %v1842_v1, %v1330_v7  ;;  %v1723_v7 = vld [vmem:[%s2442_s11 + $0x50] sm:$0xff] }
 0xccc   : > { %v1339_v14 = vsel %vm1336_vm14, %v1338_v12, %v1334_v4  ;;  %v1251_v15 = vmul.f32 %v1844_v10, %v1250_v13  ;;  %v1721_v12 = vld [vmem:[%s2442_s11 + $0x40] sm:$0xff] }
 0xccd   : > { %v1340_v16 = vmul.f32 %v1836_v46, %v1339_v14  ;;  %v1803_v4 = vld [vmem:[%s2441_s10 + $0x1] ss:$0 sm:$0xff] }
 0xcce   : > { %v1252_v17 = vadd.f32 %v1844_v10, %v1251_v15 }
 0xccf   : > { %1706 = vmatmul.msk.f32.vlgmr.msrb.gmra.mxu1 %vm525_vm1, %v1340_v16  ;;  %v1804_v16 = vld [vmem:[%s2443_s12 + $0x1] ss:$0 sm:$0xff] }
 0xcd0   : > { %v1256_v21 = vsel %vm1255_vm3, %v1844_v10, %v1252_v17 }
 0xcd1   : > { %v1261_v23 = vsel %vm1258_vm6, %v1260_v22, %v1256_v21 }
 0xcd2   : > { %v1208_v20 = vpop.f32.mrf.mxu1  ;;  %v1262_v25 = vmul.f32 %v1840_v51, %v1261_v23  ;;  %v1728_v51 = vld [vmem:[%s2442_s11 + $0x78] sm:$0xff] }
 0xcd3   : > { %1368 = vrot.lane.b32.xlu0 %v1208_v20, %s2486_s30  ;;  %1509 = vmatpush.msrb.mxu2 %v1728_v51  ;;  %s1609_s30 = scalar_lea.hbm %s2446_s15, %s2032_s22 }
 0xcd4   : > { %s1613_s16 = sshll.u32 %s1609_s30, 4  ;;  %s1614_s16 = int_to_ptr.hbm [resolvable:$true] %s1613_s16 }
 0xcd5   : > { %1510 = vmatpush.msrb.mxu2 %v1727_v52  ;;  %s1865_s0 = sshra.s32 %s1614_s16, 4  ;;  %s1866_s0 = int_to_ptr.hbm [resolvable:$true] %s1865_s0 }
 0xcd6   : > { %s1867_s1 = scalar_lea.hbm %s1866_s0, 1  ;;  %p1872_p0 = scmp.lt.s32.totalorder %s1866_s0, %s2446_s15 }
 0xcd7   : > { %1511 = vmatpush.msrb.mxu2 %v1726_v53  ;;  %p1868_p11 = scmp.ne.s32.totalorder %s1866_s0, %s1867_s1  ;;  %p1873_p1 = scmp.lt.s32.totalorder %s1871_s24, %s1867_s1 }
 0xcd8   : > { %v1264_v24 = vpop.permute.xlu1 %1263 }
 0xcd9   : > { %1284 = vmatpush.msrb.mxu0 %v1264_v24  ;;  %1512 = vmatpush.msrb.mxu2 %v1725_v56  ;;  %p1869_p12 = pnand %p1868_p11, %p2049_p5  ;;  %p1874_p2 = por %p1873_p1, %p1872_p0 }
 0xcda   : > { %1703 = vmatmul.msk.f32.vlgmr.msrb.gmra.mxu0 %vm525_vm1, %v1262_v25 }
 0xcdb   : > { %1475 = vmatpush.msra.mxu0 %v1718_v49  ;;  %1513 = vmatpush.msrb.mxu2 %v1724_v60  ;;  %v1575_v60 = vld [vmem:[%s2445_s14] sm:$0x1]  ;;  %p1870_p13 = pneg %p1869_p12 }
 0xcdd   : > { %1514 = vmatpush.msrb.mxu2 %v1723_v7  ;;  %p1875_p3 = pnand %p1874_p2, %p1870_p13 }
 0xcdf   : > { %1515 = vmatpush.msrb.mxu2 %v1722_v11 }
 0xce1   : > { %1516 = vmatpush.msrb.mxu2 %v1721_v12 }
 0xd45   : > { %v1369_v33 = vpop.permute.xlu0 %1368 }
 0xd46   : > { %v1379_v34 = vsel %vm525_vm1, %v2278_v31, %v1369_v33  ;;  %v1571_v33 = vld [vmem:[%s2444_s13] sm:$0xff] }
 0xd4c   : > { %v1364_v26 = vpop.f32.mrf.mxu1 }
 0xd4d   : > { %1376 = vrot.lane.b32.xlu1 %v1364_v26, %s2487_s20 }
 0xd57   : > { %v1286_v27 = vpop.f32.mrf.mxu0 }
 0xd58   : > { %1372 = vrot.lane.b32.xlu0 %v1286_v27, %s2488_s27  ;;  %v1574_v27 = vld [vmem:[%s2444_s13 + $0x18] sm:$0xff] }
 0xd59   : > { %1591 = vmatpush.msra.mxu1 %v1574_v27 }
 0xd5b   : > { %1592 = vmatpush.msra.mxu1 %v1573_v28 }
 0xd5d   : > { %1593 = vmatpush.msra.mxu1 %v1572_v30 }
 0xd5f   : > { %1594 = vmatpush.msra.mxu1 %v1571_v33 }
 0xdbf   : > { %v1377_v36 = vpop.permute.xlu1 %1376 }
 0xdca   : > { %v1373_v35 = vpop.permute.xlu0 %1372 }
 0xdcb   : > { %v1380_v37 = vsel %vm847_vm4, %v1379_v34, %v1373_v35 }
 0xdcc   : > { %v1381_v38 = vsel %vm849_vm5, %v1380_v37, %v1377_v36  ;;  %v1930_v37 = vmov 8.0  }
 0xdcd   : > { %1712 = vmatmul.msk.f32.vlgmr.msra.gmra.mxu3 %vm498_vm0, %v1381_v38 }
 0xe50   : > { %v1412_v40 = vpop.f32.mrf.mxu3 }
 0xe51   : > { %v1413_v42 = vadd.f32 %v1800_v39, %v1412_v40 }
 0xe53   : > { %v1415_v43 = vadd.f32 %v1413_v42, %v2240_v59  ;;  %v1717_v59 = vld [vmem:[%s2440_s9 + $0x30] sm:$0xff]  ;;  %v1805_v42 = vld [vmem:[%s2438_s7 + $0x1] ss:$0 sm:$0xff] }
 0xe54   : > { %1476 = vmatpush.msra.mxu0 %v1717_v59 }
 0xe55   : > { %v1420_v44 = vsel %vm498_vm0, %v1415_v43, 0.0 }
 0xe56   : > { %1421 = vadd.xlane.f32.xlu2 %v1420_v44  ;;  %1477 = vmatpush.msra.mxu0 %v1716_v50  ;;  %v1806_v44 = vld [vmem:[%s2439_s8 + $0x1] ss:$0 sm:$0xff] }
 0xe58   : > { %1478 = vmatpush.msra.mxu0 %v1715_v41 }
 0xec9   : > { %v1422_v31 = vpop.xlane.xlu2 %1421 }
 0xeca   : > { %v1423_v45 = vmul.f32 %v1422_v31, %v2163_v57 }
 0xecc   : > { %v1424_v46 = vsub.f32 %v1415_v43, %v1423_v45 }
 0xece   : > { %v1425_v47 = vmul.f32 %v1424_v46, %v1424_v46 }
 0xed0   : > { %v1426_v48 = vsel %vm498_vm0, %v1425_v47, 0.0 }
 0xed1   : > { %1427 = vadd.xlane.f32.xlu0 %v1426_v48 }
 0xf44   : > { %v1428_v54 = vpop.xlane.xlu0 %1427 }
 0xf45   : > { %v1429_v55 = vmul.f32 %v1428_v54, %v2163_v57 }
 0xf47   : > { %v1430_v58 = vadd.f32 1e-05, %v1429_v55 }
 0xf49   : > { %1845 = vrsqrt.f32 %v1430_v58  ;;  %vm1437_vm4 = vweird.f32 %v1430_v58 }
 0xf4f   : > { %v1846_v61 = vpop.eup %1845 }
 0xf50   : > { %v1432_v62 = vmul.f32 %v1846_v61, %v1430_v58  ;;  %vm1438_vm1 = vweird.f32 %v1846_v61 }
 0xf51   : > { %vm1439_vm5 = vmor %vm1437_vm4, %vm1438_vm1 }
 0xf52   : > { %v1433_v63 = vmul.f32 %v1846_v61, %v1432_v62 }
 0xf54   : > { %v1434_v0 = vmul.f32 0.5, %v1433_v63 }
 0xf56   : > { %v1435_v1 = vsub.f32 1.5, %v1434_v0 }
 0xf58   : > { %v1436_v2 = vmul.f32 %v1846_v61, %v1435_v1 }
 0xf5a   : > { %v1440_v5 = vsel %vm1439_vm5, %v1846_v61, %v1436_v2 }
 0xf5b   : > { %v1441_v6 = vmul.f32 %v1440_v5, %v1424_v46 }
 0xf5d   : > { %v1445_v9 = vmul.f32 %v1801_v3, %v1441_v6 }
 0xf5f   : > { %v1449_v10 = vadd.f32 %v1802_v8, %v1445_v9 }
 0xf61   : > { %1720 = vmatmul.msk.f32.vlgmr.msra.gmra.mxu0 %vm498_vm0, %v1449_v10 }
 0xfde   : > { %v1480_v13 = vpop.f32.mrf.mxu0 }
 0xfdf   : > { %v1481_v14 = vadd.f32 %v1803_v4, %v1480_v13 }
 0xfe1   : > { %v1483_v15 = vmax.f32 %v1481_v14, 0.0 }
 0xfe3   : > { %1730 = vmatmul.msk.f32.vlgmr.msrb.gmra.mxu2 %vm966_vm10, %v1483_v15 }
0x1066   : > { %v1518_v17 = vpop.f32.mrf.mxu2 }
0x1067   : > { %v1519_v18 = vadd.f32 %v1804_v16, %v1518_v17 }
0x1069   : > { %v1521_v19 = vadd.f32 %v1519_v18, %v1449_v10 }
0x106b   : > { %v1526_v20 = vsel %vm498_vm0, %v1521_v19, 0.0 }
0x106c   : > { %1527 = vadd.xlane.f32.xlu1 %v1526_v20 }
0x10df   : > { %v1528_v21 = vpop.xlane.xlu1 %1527 }
0x10e0   : > { %v1529_v22 = vmul.f32 %v1528_v21, %v2163_v57 }
0x10e2   : > { %v1530_v23 = vsub.f32 %v1521_v19, %v1529_v22 }
0x10e4   : > { %v1531_v24 = vmul.f32 %v1530_v23, %v1530_v23 }
0x10e6   : > { %v1532_v25 = vsel %vm498_vm0, %v1531_v24, 0.0 }
0x10e7   : > { %1533 = vadd.xlane.f32.xlu2 %v1532_v25 }
0x115a   : > { %v1534_v26 = vpop.xlane.xlu2 %1533 }
0x115b   : > { %v1535_v29 = vmul.f32 %v1534_v26, %v2163_v57 }
0x115d   : > { %v1536_v32 = vadd.f32 1e-05, %v1535_v29 }
0x115f   : > { %1847 = vrsqrt.f32 %v1536_v32  ;;  %vm1543_vm7 = vweird.f32 %v1536_v32 }
0x1160   : > { %1849 = vrcp.f32 %v1930_v37 }
0x1165   : > { %v1848_v34 = vpop.eup %1847 }
0x1166   : > { %v1538_v35 = vmul.f32 %v1848_v34, %v1536_v32  ;;  %vm1544_vm10 = vweird.f32 %v1848_v34  ;;  %v1850_v39 = vpop.eup %1849 }
0x1167   : > { %vm1545_vm8 = vmor %vm1543_vm7, %vm1544_vm10  ;;  %v1564_v45 = vmul.f32 8.0, %v1850_v39  ;;  %vm1568_vm9 = vweird.f32 %v1850_v39 }
0x1168   : > { %v1539_v36 = vmul.f32 %v1848_v34, %v1538_v35 }
0x1169   : > { %v1565_v48 = vsub.f32 1.0, %v1564_v45 }
0x116a   : > { %v1540_v57 = vmul.f32 0.5, %v1539_v36 }
0x116b   : > { %v1566_v50 = vmul.f32 %v1850_v39, %v1565_v48 }
0x116c   : > { %v1541_v38 = vsub.f32 1.5, %v1540_v57 }
0x116d   : > { %v1567_v52 = vadd.f32 %v1850_v39, %v1566_v50 }
0x116e   : > { %v1542_v40 = vmul.f32 %v1848_v34, %v1541_v38 }
0x116f   : > { %v1569_v55 = vsel %vm1568_vm9, %v1850_v39, %v1567_v52 }
0x1170   : > { %v1546_v43 = vsel %vm1545_vm8, %v1848_v34, %v1542_v40 }
0x1171   : > { %v1547_v31 = vmul.f32 %v1546_v43, %v1530_v23 }
0x1173   : > { %v1551_v46 = vmul.f32 %v1805_v42, %v1547_v31 }
0x1175   : > { %v1555_v47 = vadd.f32 %v1806_v44, %v1551_v46 }
0x1177   : > { %v1556_v49 = vsel %vm498_vm0, %v1555_v47, 0.0 }
0x1178   : > { %v1557_v59 = vrot.slane %v1556_v49, 4 }
0x117a   : > { %v1558_v41 = vadd.f32 %v1557_v59, %v1556_v49 }
0x117c   : > { %v1559_v51 = vrot.slane %v1558_v41, 2 }
0x117e   : > { %v1560_v53 = vadd.f32 %v1559_v51, %v1558_v41 }
0x1180   : > { %v1561_v54 = vrot.slane %v1560_v53, 1 }
0x1182   : > { %v1562_v56 = vadd.f32 %v1561_v54, %v1560_v53 }
0x1184   : > { %v1570_v58 = vmul.f32 %v1569_v55, %v1562_v56 }
0x1186   : > { %1733 = vmatmul.msk.f32.vlgmr.msra.gmra.mxu1 %vm498_vm0, %v1570_v58 }
0x1203   : > { %v1596_v61 = vpop.f32.mrf.mxu1 }
0x1204   : > { %v1597_v62 = vadd.f32 %v1596_v61, %v1575_v60 }
0x1206   : > { %1599 = vst [vmem:[%s484_s29] sm:$0x1] %v1597_v62 }
0x1207   : > { %1878 = shalt.err (!%p1875_p3)
}
0x1208   : > { %1736 = dma.vmem_to_hbm [thread:$0]  (%p2049_p5), %s1612_s26, 16, %s1614_s16, %s1601_s17  }
0x1209 PF: > { %p1742_p4 = scmp.ge.s32.totalorder %s1913_s21, 2  ;;  %s1625_s30 = sand.u32 1, %s1901_s18  }
0x120a   : > { %s1626_s29 = scalar_lea.sflag [#allocation3], %s1625_s30 }
0x120b   : > { %p1739_p7 = pnand %p1742_p4, %p2053_p6 }
0x120d   : > { %p1740_p8 = pneg %p1739_p7 }
0x120f   : > { %1896 = dma.done.wait (%p1740_p8), %s1626_s29, 16  }
0x1210   : > { %1898 = vsyncadd (%p1740_p8), %s1626_s29, 4294967280  ;;  %s2490_s21 = sld [smem:[#allocation6_spill]]  ;;  %s2493_s18 = smov %s1905_s19 }
0x1211   : > { %s2491_s0 = sld [smem:[#allocation5_spill]] }
0x1212   : > { %s2492_s20 = sld [smem:[#allocation7_spill]] }
0x1216   : > { %p25_p9 = scmp.ge.s32.totalorder %s2490_s21, 4  }
0x1217   : > { %s2494_s19 = smov %s2491_s0 }
0x1218   :  { %27 = sbr.rel (!%p25_p9) target bundleno = 6 (0x6), region = 127 }
0x121d   :  { %1631 = vsyncpa [#allocation3], 1 }
0x121e   :  { %1633 = vsyncpa [#allocation3 + $0x1], 1 }

</bundles_post_ra>
